<compile_context>
chip_gen: v6e
topology: v6e:2x2x1
jax: 0.10.0
libtpu: 0.0.40
codegen_flags: <defaults>
</compile_context>

<pallas_src>
import functools
import math

import jax
import jax.numpy as jnp
from jax.experimental import pallas as pl
from jax.experimental.pallas import tpu as pltpu


def _layer_norm(x, gamma, beta, eps=1e-5):
    # Biased variance over the last axis, matching nn.LayerNorm. gamma/beta broadcast.
    mean = jnp.mean(x, axis=-1, keepdims=True)
    var = jnp.mean((x - mean) ** 2, axis=-1, keepdims=True)
    return (x - mean) * jax.lax.rsqrt(var + eps) * gamma + beta


# ----------------------------------------------------------------------------
# Kernel 1: fused self-attention block
#   out = LayerNorm1(src + OutProj(MHA(src, mask)))   (one batch element / grid step)
# ----------------------------------------------------------------------------
def _attn_block_kernel(num_heads, head_dim,
                       src_ref, mask_ref,
                       wq_ref, bq_ref, wk_ref, bk_ref, wv_ref, bv_ref,
                       wo_ref, bo_ref, g1_ref, be1_ref,
                       out_ref):
    x = src_ref[0]                                   # (T, d_model)
    mask = mask_ref[...]                             # (T, T) additive mask
    inv_scale = 1.0 / math.sqrt(head_dim)

    q = jnp.dot(x, wq_ref[...], preferred_element_type=jnp.float32) + bq_ref[...]
    k = jnp.dot(x, wk_ref[...], preferred_element_type=jnp.float32) + bk_ref[...]
    v = jnp.dot(x, wv_ref[...], preferred_element_type=jnp.float32) + bv_ref[...]

    # Per-head attention via static lane slices (head_dim multiples).
    # TODO(synk): for long T this should be tiled flash-style over the KV axis;
    # here the (T, T) score tile fits a single VMEM block.
    heads = []
    for h in range(num_heads):
        sl = slice(h * head_dim, (h + 1) * head_dim)
        qh, kh, vh = q[:, sl], k[:, sl], v[:, sl]                  # (T, hd)
        s = jax.lax.dot_general(qh, kh, (((1,), (1,)), ((), ())),  # q @ k^T
                                preferred_element_type=jnp.float32)
        s = s * inv_scale + mask                                   # (T, T)
        s = s - jnp.max(s, axis=-1, keepdims=True)                 # stable softmax
        p = jnp.exp(s)
        p = p / jnp.sum(p, axis=-1, keepdims=True)
        heads.append(jnp.dot(p, vh, preferred_element_type=jnp.float32))
    attn = jnp.concatenate(heads, axis=-1)                         # (T, d_model)

    proj = jnp.dot(attn, wo_ref[...], preferred_element_type=jnp.float32) + bo_ref[...]
    # TODO(synk): dropout / dropout1 are identity in eval mode; a training-mode
    # version would draw masks with pltpu.prng_seed / pltpu.prng_random_bits.
    out_ref[0] = _layer_norm(x + proj, g1_ref[...], be1_ref[...])


# ----------------------------------------------------------------------------
# Kernel 2: fused feed-forward block
#   out = LayerNorm2(x + W2 @ relu(W1 @ x + b1) + b2)
# ----------------------------------------------------------------------------
def _ffn_block_kernel(src_ref, w1_ref, b1_ref, w2_ref, b2_ref, g2_ref, be2_ref,
                      out_ref):
    x = src_ref[0]                                                 # (T, d_model)
    h = jnp.dot(x, w1_ref[...], preferred_element_type=jnp.float32) + b1_ref[...]
    h = jnp.maximum(h, 0.0)                                        # ReLU
    f = jnp.dot(h, w2_ref[...], preferred_element_type=jnp.float32) + b2_ref[...]
    out_ref[0] = _layer_norm(x + f, g2_ref[...], be2_ref[...])


# ----------------------------------------------------------------------------
# pallas_call wrappers
# ----------------------------------------------------------------------------
def _full_spec(shape):
    """Whole-array block, same block index at every grid step."""
    nd = len(shape)
    return pl.BlockSpec(shape, lambda b: (0,) * nd)


def attention_block(src, mask, p, num_heads):
    B, T, d = src.shape
    head_dim = d // num_heads
    kernel = functools.partial(_attn_block_kernel, num_heads, head_dim)
    row = lambda v: v.reshape(1, -1)
    return pl.pallas_call(
        kernel,
        out_shape=jax.ShapeDtypeStruct((B, T, d), jnp.float32),
        grid=(B,),
        in_specs=[
            pl.BlockSpec((1, T, d), lambda b: (b, 0, 0)),   # src
            _full_spec((T, T)),                             # mask
            _full_spec((d, d)), _full_spec((1, d)),         # wq, bq
            _full_spec((d, d)), _full_spec((1, d)),         # wk, bk
            _full_spec((d, d)), _full_spec((1, d)),         # wv, bv
            _full_spec((d, d)), _full_spec((1, d)),         # wo, bo
            _full_spec((1, d)), _full_spec((1, d)),         # gamma1, beta1
        ],
        out_specs=pl.BlockSpec((1, T, d), lambda b: (b, 0, 0)),
        compiler_params=pltpu.CompilerParams(
            dimension_semantics=("parallel",)),
    )(src, mask,
      p["wq"], row(p["bq"]), p["wk"], row(p["bk"]),
      p["wv"], row(p["bv"]), p["wo"], row(p["bo"]),
      row(p["g1"]), row(p["be1"]))


def ffn_block(x, p):
    B, T, d = x.shape
    dff = p["w1"].shape[1]
    row = lambda v: v.reshape(1, -1)
    return pl.pallas_call(
        _ffn_block_kernel,
        out_shape=jax.ShapeDtypeStruct((B, T, d), jnp.float32),
        grid=(B,),
        in_specs=[
            pl.BlockSpec((1, T, d), lambda b: (b, 0, 0)),   # src
            _full_spec((d, dff)), _full_spec((1, dff)),     # w1, b1
            _full_spec((dff, d)), _full_spec((1, d)),       # w2, b2
            _full_spec((1, d)), _full_spec((1, d)),         # gamma2, beta2
        ],
        out_specs=pl.BlockSpec((1, T, d), lambda b: (b, 0, 0)),
        compiler_params=pltpu.CompilerParams(
            dimension_semantics=("parallel",)),
    )(x, p["w1"], row(p["b1"]), p["w2"], row(p["b2"]), row(p["g2"]), row(p["be2"]))


# ----------------------------------------------------------------------------
# Parameters + module wrapper (mirrors the PyTorch module; dropout = identity)
# ----------------------------------------------------------------------------
def init_encoder_layer_params(key, d_model, num_heads, dim_feedforward=None):
    if dim_feedforward is None:
        dim_feedforward = 4 * d_model

    def linear(k, fan_in, fan_out):
        # nn.Linear default U(-1/sqrt(fan_in), 1/sqrt(fan_in)); weight stored
        # PRE-TRANSPOSED as (in, out) so kernels compute x @ W (lane-dense output).
        bound = 1.0 / math.sqrt(fan_in)
        kw, kb = jax.random.split(k)
        w = jax.random.uniform(kw, (fan_in, fan_out), jnp.float32, -bound, bound)
        b = jax.random.uniform(kb, (fan_out,), jnp.float32, -bound, bound)
        return w, b

    ks = jax.random.split(key, 6)
    wq, bq = linear(ks[0], d_model, d_model)
    wk, bk = linear(ks[1], d_model, d_model)
    wv, bv = linear(ks[2], d_model, d_model)
    wo, bo = linear(ks[3], d_model, d_model)
    w1, b1 = linear(ks[4], d_model, dim_feedforward)
    w2, b2 = linear(ks[5], dim_feedforward, d_model)
    ones = jnp.ones((d_model,), jnp.float32)
    zeros = jnp.zeros((d_model,), jnp.float32)
    return dict(wq=wq, bq=bq, wk=wk, bk=bk, wv=wv, bv=bv, wo=wo, bo=bo,
                w1=w1, b1=b1, w2=w2, b2=b2,
                g1=ones, be1=zeros, g2=ones, be2=zeros)


class CustomTransformerEncoderLayer:
    """JAX/Pallas port of the PyTorch module (eval mode: dropout = identity)."""

    def __init__(self, d_model, num_heads, dropout=0.1, dim_feedforward=None, *, key):
        if d_model % num_heads != 0:
            raise ValueError("d_model must be divisible by num_heads")
        self.d_model = d_model
        self.num_heads = num_heads
        self.params = init_encoder_layer_params(key, d_model, num_heads, dim_feedforward)

    def __call__(self, src, mask=None):
        _, T, _ = src.shape
        if mask is None:
            mask = jnp.zeros((T, T), jnp.float32)
        y = attention_block(src, mask, self.params, self.num_heads)
        return ffn_block(y, self.params)


# ----------------------------------------------------------------------------
# Pure-JAX reference for correctness
# ----------------------------------------------------------------------------
def ref_forward(params, src, mask, num_heads):
    B, T, d = src.shape
    hd = d // num_heads
    hi = jax.lax.Precision.HIGHEST
    if mask is None:
        mask = jnp.zeros((T, T), jnp.float32)

    def lin(x, w, b):
        return jnp.einsum("btd,df->btf", x, w, precision=hi) + b

    split = lambda x: x.reshape(B, T, num_heads, hd).transpose(0, 2, 1, 3)
    q = split(lin(src, params["wq"], params["bq"]))
    k = split(lin(src, params["wk"], params["bk"]))
    v = split(lin(src, params["wv"], params["bv"]))
    s = jnp.einsum("bhqd,bhkd->bhqk", q, k, precision=hi) / math.sqrt(hd) + mask
    w = jax.nn.softmax(s, axis=-1)
    o = jnp.einsum("bhqk,bhkd->bhqd", w, v, precision=hi)
    o = o.transpose(0, 2, 1, 3).reshape(B, T, d)
    o = lin(o, params["wo"], params["bo"])
    x = _layer_norm(src + o, params["g1"], params["be1"])
    h = jnp.maximum(lin(x, params["w1"], params["b1"]), 0.0)
    f = lin(h, params["w2"], params["b2"])
    return _layer_norm(x + f, params["g2"], params["be2"])


# ----------------------------------------------------------------------------
# Main
# ----------------------------------------------------------------------------
if __name__ == "__main__":
    key = jax.random.PRNGKey(0)
    k_param, k_x = jax.random.split(key)

    B, T, d_model, num_heads, dim_ff = 2, 16, 128, 4, 256
    layer = CustomTransformerEncoderLayer(d_model, num_heads, dropout=0.1,
                                          dim_feedforward=dim_ff, key=k_param)

    src = jax.random.normal(k_x, (B, T, d_model), jnp.float32)
    # Additive causal mask (broadcast over batch and heads), as in the PyTorch forward.
    mask = jnp.where(jnp.tril(jnp.ones((T, T), dtype=bool)), 0.0, -1e9).astype(jnp.float32)

    out = layer(src, mask)
    out = jax.block_until_ready(out)

    assert out.shape == (B, T, d_model), out.shape
    assert out.dtype == jnp.float32, out.dtype

    ref = ref_forward(layer.params, src, mask, num_heads)
    max_err = float(jnp.max(jnp.abs(out - ref)))
    assert jnp.allclose(out, ref, atol=2e-3, rtol=2e-3), max_err

    print("KERNEL_OK")
</pallas_src>

<mosaic_0001>
module attributes {stable_mosaic.version = 11 : i64} {
  func.func @_attn_block_kernel(%arg0: i32, %arg1: memref<1x16x128xf32, #tpu.memory_space<vmem>>, %arg2: memref<16x16xf32, #tpu.memory_space<vmem>>, %arg3: memref<128x128xf32, #tpu.memory_space<vmem>>, %arg4: memref<1x128xf32, #tpu.memory_space<vmem>>, %arg5: memref<128x128xf32, #tpu.memory_space<vmem>>, %arg6: memref<1x128xf32, #tpu.memory_space<vmem>>, %arg7: memref<128x128xf32, #tpu.memory_space<vmem>>, %arg8: memref<1x128xf32, #tpu.memory_space<vmem>>, %arg9: memref<128x128xf32, #tpu.memory_space<vmem>>, %arg10: memref<1x128xf32, #tpu.memory_space<vmem>>, %arg11: memref<1x128xf32, #tpu.memory_space<vmem>>, %arg12: memref<1x128xf32, #tpu.memory_space<vmem>>, %arg13: memref<1x16x128xf32, #tpu.memory_space<vmem>>) attributes {dimension_semantics = [#tpu.dimension_semantics<parallel>], iteration_bounds = array<i64: 2>, scalar_prefetch = 0 : i64, scratch_operands = 0 : i64, tpu.core_type = #tpu.core_type<tc>, window_params = [{transform_indices = @transform_0, window_bounds = array<i64: 1, 16, 128>}, {pipeline_mode = #tpu.pipeline_mode<synchronous>, transform_indices = @transform_1, window_bounds = array<i64: 16, 16>}, {pipeline_mode = #tpu.pipeline_mode<synchronous>, transform_indices = @transform_2, window_bounds = array<i64: 128, 128>}, {pipeline_mode = #tpu.pipeline_mode<synchronous>, transform_indices = @transform_3, window_bounds = array<i64: 1, 128>}, {pipeline_mode = #tpu.pipeline_mode<synchronous>, transform_indices = @transform_4, window_bounds = array<i64: 128, 128>}, {pipeline_mode = #tpu.pipeline_mode<synchronous>, transform_indices = @transform_5, window_bounds = array<i64: 1, 128>}, {pipeline_mode = #tpu.pipeline_mode<synchronous>, transform_indices = @transform_6, window_bounds = array<i64: 128, 128>}, {pipeline_mode = #tpu.pipeline_mode<synchronous>, transform_indices = @transform_7, window_bounds = array<i64: 1, 128>}, {pipeline_mode = #tpu.pipeline_mode<synchronous>, transform_indices = @transform_8, window_bounds = array<i64: 128, 128>}, {pipeline_mode = #tpu.pipeline_mode<synchronous>, transform_indices = @transform_9, window_bounds = array<i64: 1, 128>}, {pipeline_mode = #tpu.pipeline_mode<synchronous>, transform_indices = @transform_10, window_bounds = array<i64: 1, 128>}, {pipeline_mode = #tpu.pipeline_mode<synchronous>, transform_indices = @transform_11, window_bounds = array<i64: 1, 128>}, {transform_indices = @transform_12, window_bounds = array<i64: 1, 16, 128>}]} {
    %c0 = arith.constant 0 : index
    %c0_0 = arith.constant 0 : index
    %c0_1 = arith.constant 0 : index
    %0 = vector.load %arg1[%c0, %c0_0, %c0_1] : memref<1x16x128xf32, #tpu.memory_space<vmem>>, vector<1x16x128xf32>
    %1 = vector.shape_cast %0 : vector<1x16x128xf32> to vector<16x128xf32>
    %c0_2 = arith.constant 0 : index
    %c0_3 = arith.constant 0 : index
    %2 = vector.load %arg2[%c0_2, %c0_3] : memref<16x16xf32, #tpu.memory_space<vmem>>, vector<16x16xf32>
    %c0_4 = arith.constant 0 : index
    %c0_5 = arith.constant 0 : index
    %3 = vector.load %arg3[%c0_4, %c0_5] : memref<128x128xf32, #tpu.memory_space<vmem>>, vector<128x128xf32>
    %cst = arith.constant dense<0.000000e+00> : vector<16x128xf32>
    %4 = tpu.matmul %1, %3, %cst {dimension_numbers = #tpu.dot_dimension_numbers<[1], [0], [0], [1], [0, 0, 1, 1], [], []>} : vector<16x128xf32>, vector<128x128xf32>, vector<16x128xf32> -> vector<16x128xf32>
    %c0_6 = arith.constant 0 : index
    %c0_7 = arith.constant 0 : index
    %5 = vector.load %arg4[%c0_6, %c0_7] : memref<1x128xf32, #tpu.memory_space<vmem>>, vector<1x128xf32>
    %6 = vector.broadcast %5 : vector<1x128xf32> to vector<16x128xf32>
    %7 = arith.addf %4, %6 : vector<16x128xf32>
    %c0_8 = arith.constant 0 : index
    %c0_9 = arith.constant 0 : index
    %8 = vector.load %arg5[%c0_8, %c0_9] : memref<128x128xf32, #tpu.memory_space<vmem>>, vector<128x128xf32>
    %cst_10 = arith.constant dense<0.000000e+00> : vector<16x128xf32>
    %9 = tpu.matmul %1, %8, %cst_10 {dimension_numbers = #tpu.dot_dimension_numbers<[1], [0], [0], [1], [0, 0, 1, 1], [], []>} : vector<16x128xf32>, vector<128x128xf32>, vector<16x128xf32> -> vector<16x128xf32>
    %c0_11 = arith.constant 0 : index
    %c0_12 = arith.constant 0 : index
    %10 = vector.load %arg6[%c0_11, %c0_12] : memref<1x128xf32, #tpu.memory_space<vmem>>, vector<1x128xf32>
    %11 = vector.broadcast %10 : vector<1x128xf32> to vector<16x128xf32>
    %12 = arith.addf %9, %11 : vector<16x128xf32>
    %c0_13 = arith.constant 0 : index
    %c0_14 = arith.constant 0 : index
    %13 = vector.load %arg7[%c0_13, %c0_14] : memref<128x128xf32, #tpu.memory_space<vmem>>, vector<128x128xf32>
    %cst_15 = arith.constant dense<0.000000e+00> : vector<16x128xf32>
    %14 = tpu.matmul %1, %13, %cst_15 {dimension_numbers = #tpu.dot_dimension_numbers<[1], [0], [0], [1], [0, 0, 1, 1], [], []>} : vector<16x128xf32>, vector<128x128xf32>, vector<16x128xf32> -> vector<16x128xf32>
    %c0_16 = arith.constant 0 : index
    %c0_17 = arith.constant 0 : index
    %15 = vector.load %arg8[%c0_16, %c0_17] : memref<1x128xf32, #tpu.memory_space<vmem>>, vector<1x128xf32>
    %16 = vector.broadcast %15 : vector<1x128xf32> to vector<16x128xf32>
    %17 = arith.addf %14, %16 : vector<16x128xf32>
    %18 = vector.extract_strided_slice %7 {offsets = [0, 0], sizes = [16, 32], strides = [1, 1]} : vector<16x128xf32> to vector<16x32xf32>
    %19 = vector.extract_strided_slice %12 {offsets = [0, 0], sizes = [16, 32], strides = [1, 1]} : vector<16x128xf32> to vector<16x32xf32>
    %20 = vector.extract_strided_slice %17 {offsets = [0, 0], sizes = [16, 32], strides = [1, 1]} : vector<16x128xf32> to vector<16x32xf32>
    %cst_18 = arith.constant dense<0.000000e+00> : vector<16x16xf32>
    %21 = tpu.matmul %18, %19, %cst_18 {dimension_numbers = #tpu.dot_dimension_numbers<[1], [1], [0], [0], [0, 0, 1, 0], [], []>} : vector<16x32xf32>, vector<16x32xf32>, vector<16x16xf32> -> vector<16x16xf32>
    %cst_19 = arith.constant 0.176776692 : f32
    %22 = vector.broadcast %cst_19 : f32 to vector<16x16xf32>
    %23 = arith.mulf %21, %22 : vector<16x16xf32>
    %24 = arith.addf %23, %2 : vector<16x16xf32>
    %cst_20 = arith.constant dense<0xFF800000> : vector<16xf32>
    %25 = vector.multi_reduction <maximumf>, %24, %cst_20 [1] : vector<16x16xf32> to vector<16xf32>
    %26 = vector.shape_cast %25 : vector<16xf32> to vector<16x1xf32>
    %27 = vector.broadcast %26 : vector<16x1xf32> to vector<16x16xf32>
    %28 = arith.subf %24, %27 : vector<16x16xf32>
    %29 = math.exp %28 : vector<16x16xf32>
    %cst_21 = arith.constant dense<0.000000e+00> : vector<16xf32>
    %30 = vector.multi_reduction <add>, %29, %cst_21 [1] : vector<16x16xf32> to vector<16xf32>
    %31 = vector.shape_cast %30 : vector<16xf32> to vector<16x1xf32>
    %32 = vector.broadcast %31 : vector<16x1xf32> to vector<16x16xf32>
    %33 = arith.divf %29, %32 : vector<16x16xf32>
    %cst_22 = arith.constant dense<0.000000e+00> : vector<16x32xf32>
    %34 = tpu.matmul %33, %20, %cst_22 {dimension_numbers = #tpu.dot_dimension_numbers<[1], [0], [0], [1], [0, 0, 1, 1], [], []>} : vector<16x16xf32>, vector<16x32xf32>, vector<16x32xf32> -> vector<16x32xf32>
    %35 = vector.extract_strided_slice %7 {offsets = [0, 32], sizes = [16, 32], strides = [1, 1]} : vector<16x128xf32> to vector<16x32xf32>
    %36 = vector.extract_strided_slice %12 {offsets = [0, 32], sizes = [16, 32], strides = [1, 1]} : vector<16x128xf32> to vector<16x32xf32>
    %37 = vector.extract_strided_slice %17 {offsets = [0, 32], sizes = [16, 32], strides = [1, 1]} : vector<16x128xf32> to vector<16x32xf32>
    %cst_23 = arith.constant dense<0.000000e+00> : vector<16x16xf32>
    %38 = tpu.matmul %35, %36, %cst_23 {dimension_numbers = #tpu.dot_dimension_numbers<[1], [1], [0], [0], [0, 0, 1, 0], [], []>} : vector<16x32xf32>, vector<16x32xf32>, vector<16x16xf32> -> vector<16x16xf32>
    %cst_24 = arith.constant 0.176776692 : f32
    %39 = vector.broadcast %cst_24 : f32 to vector<16x16xf32>
    %40 = arith.mulf %38, %39 : vector<16x16xf32>
    %41 = arith.addf %40, %2 : vector<16x16xf32>
    %cst_25 = arith.constant dense<0xFF800000> : vector<16xf32>
    %42 = vector.multi_reduction <maximumf>, %41, %cst_25 [1] : vector<16x16xf32> to vector<16xf32>
    %43 = vector.shape_cast %42 : vector<16xf32> to vector<16x1xf32>
    %44 = vector.broadcast %43 : vector<16x1xf32> to vector<16x16xf32>
    %45 = arith.subf %41, %44 : vector<16x16xf32>
    %46 = math.exp %45 : vector<16x16xf32>
    %cst_26 = arith.constant dense<0.000000e+00> : vector<16xf32>
    %47 = vector.multi_reduction <add>, %46, %cst_26 [1] : vector<16x16xf32> to vector<16xf32>
    %48 = vector.shape_cast %47 : vector<16xf32> to vector<16x1xf32>
    %49 = vector.broadcast %48 : vector<16x1xf32> to vector<16x16xf32>
    %50 = arith.divf %46, %49 : vector<16x16xf32>
    %cst_27 = arith.constant dense<0.000000e+00> : vector<16x32xf32>
    %51 = tpu.matmul %50, %37, %cst_27 {dimension_numbers = #tpu.dot_dimension_numbers<[1], [0], [0], [1], [0, 0, 1, 1], [], []>} : vector<16x16xf32>, vector<16x32xf32>, vector<16x32xf32> -> vector<16x32xf32>
    %52 = vector.extract_strided_slice %7 {offsets = [0, 64], sizes = [16, 32], strides = [1, 1]} : vector<16x128xf32> to vector<16x32xf32>
    %53 = vector.extract_strided_slice %12 {offsets = [0, 64], sizes = [16, 32], strides = [1, 1]} : vector<16x128xf32> to vector<16x32xf32>
    %54 = vector.extract_strided_slice %17 {offsets = [0, 64], sizes = [16, 32], strides = [1, 1]} : vector<16x128xf32> to vector<16x32xf32>
    %cst_28 = arith.constant dense<0.000000e+00> : vector<16x16xf32>
    %55 = tpu.matmul %52, %53, %cst_28 {dimension_numbers = #tpu.dot_dimension_numbers<[1], [1], [0], [0], [0, 0, 1, 0], [], []>} : vector<16x32xf32>, vector<16x32xf32>, vector<16x16xf32> -> vector<16x16xf32>
    %cst_29 = arith.constant 0.176776692 : f32
    %56 = vector.broadcast %cst_29 : f32 to vector<16x16xf32>
    %57 = arith.mulf %55, %56 : vector<16x16xf32>
    %58 = arith.addf %57, %2 : vector<16x16xf32>
    %cst_30 = arith.constant dense<0xFF800000> : vector<16xf32>
    %59 = vector.multi_reduction <maximumf>, %58, %cst_30 [1] : vector<16x16xf32> to vector<16xf32>
    %60 = vector.shape_cast %59 : vector<16xf32> to vector<16x1xf32>
    %61 = vector.broadcast %60 : vector<16x1xf32> to vector<16x16xf32>
    %62 = arith.subf %58, %61 : vector<16x16xf32>
    %63 = math.exp %62 : vector<16x16xf32>
    %cst_31 = arith.constant dense<0.000000e+00> : vector<16xf32>
    %64 = vector.multi_reduction <add>, %63, %cst_31 [1] : vector<16x16xf32> to vector<16xf32>
    %65 = vector.shape_cast %64 : vector<16xf32> to vector<16x1xf32>
    %66 = vector.broadcast %65 : vector<16x1xf32> to vector<16x16xf32>
    %67 = arith.divf %63, %66 : vector<16x16xf32>
    %cst_32 = arith.constant dense<0.000000e+00> : vector<16x32xf32>
    %68 = tpu.matmul %67, %54, %cst_32 {dimension_numbers = #tpu.dot_dimension_numbers<[1], [0], [0], [1], [0, 0, 1, 1], [], []>} : vector<16x16xf32>, vector<16x32xf32>, vector<16x32xf32> -> vector<16x32xf32>
    %69 = vector.extract_strided_slice %7 {offsets = [0, 96], sizes = [16, 32], strides = [1, 1]} : vector<16x128xf32> to vector<16x32xf32>
    %70 = vector.extract_strided_slice %12 {offsets = [0, 96], sizes = [16, 32], strides = [1, 1]} : vector<16x128xf32> to vector<16x32xf32>
    %71 = vector.extract_strided_slice %17 {offsets = [0, 96], sizes = [16, 32], strides = [1, 1]} : vector<16x128xf32> to vector<16x32xf32>
    %cst_33 = arith.constant dense<0.000000e+00> : vector<16x16xf32>
    %72 = tpu.matmul %69, %70, %cst_33 {dimension_numbers = #tpu.dot_dimension_numbers<[1], [1], [0], [0], [0, 0, 1, 0], [], []>} : vector<16x32xf32>, vector<16x32xf32>, vector<16x16xf32> -> vector<16x16xf32>
    %cst_34 = arith.constant 0.176776692 : f32
    %73 = vector.broadcast %cst_34 : f32 to vector<16x16xf32>
    %74 = arith.mulf %72, %73 : vector<16x16xf32>
    %75 = arith.addf %74, %2 : vector<16x16xf32>
    %cst_35 = arith.constant dense<0xFF800000> : vector<16xf32>
    %76 = vector.multi_reduction <maximumf>, %75, %cst_35 [1] : vector<16x16xf32> to vector<16xf32>
    %77 = vector.shape_cast %76 : vector<16xf32> to vector<16x1xf32>
    %78 = vector.broadcast %77 : vector<16x1xf32> to vector<16x16xf32>
    %79 = arith.subf %75, %78 : vector<16x16xf32>
    %80 = math.exp %79 : vector<16x16xf32>
    %cst_36 = arith.constant dense<0.000000e+00> : vector<16xf32>
    %81 = vector.multi_reduction <add>, %80, %cst_36 [1] : vector<16x16xf32> to vector<16xf32>
    %82 = vector.shape_cast %81 : vector<16xf32> to vector<16x1xf32>
    %83 = vector.broadcast %82 : vector<16x1xf32> to vector<16x16xf32>
    %84 = arith.divf %80, %83 : vector<16x16xf32>
    %cst_37 = arith.constant dense<0.000000e+00> : vector<16x32xf32>
    %85 = tpu.matmul %84, %71, %cst_37 {dimension_numbers = #tpu.dot_dimension_numbers<[1], [0], [0], [1], [0, 0, 1, 1], [], []>} : vector<16x16xf32>, vector<16x32xf32>, vector<16x32xf32> -> vector<16x32xf32>
    %86 = tpu.concatenate %34, %51, %68, %85 in 1 : vector<16x32xf32>, vector<16x32xf32>, vector<16x32xf32>, vector<16x32xf32> -> vector<16x128xf32>
    %c0_38 = arith.constant 0 : index
    %c0_39 = arith.constant 0 : index
    %87 = vector.load %arg9[%c0_38, %c0_39] : memref<128x128xf32, #tpu.memory_space<vmem>>, vector<128x128xf32>
    %cst_40 = arith.constant dense<0.000000e+00> : vector<16x128xf32>
    %88 = tpu.matmul %86, %87, %cst_40 {dimension_numbers = #tpu.dot_dimension_numbers<[1], [0], [0], [1], [0, 0, 1, 1], [], []>} : vector<16x128xf32>, vector<128x128xf32>, vector<16x128xf32> -> vector<16x128xf32>
    %c0_41 = arith.constant 0 : index
    %c0_42 = arith.constant 0 : index
    %89 = vector.load %arg10[%c0_41, %c0_42] : memref<1x128xf32, #tpu.memory_space<vmem>>, vector<1x128xf32>
    %90 = vector.broadcast %89 : vector<1x128xf32> to vector<16x128xf32>
    %91 = arith.addf %88, %90 : vector<16x128xf32>
    %92 = arith.addf %1, %91 : vector<16x128xf32>
    %c0_43 = arith.constant 0 : index
    %c0_44 = arith.constant 0 : index
    %93 = vector.load %arg11[%c0_43, %c0_44] : memref<1x128xf32, #tpu.memory_space<vmem>>, vector<1x128xf32>
    %c0_45 = arith.constant 0 : index
    %c0_46 = arith.constant 0 : index
    %94 = vector.load %arg12[%c0_45, %c0_46] : memref<1x128xf32, #tpu.memory_space<vmem>>, vector<1x128xf32>
    %cst_47 = arith.constant dense<0.000000e+00> : vector<16xf32>
    %95 = vector.multi_reduction <add>, %92, %cst_47 [1] : vector<16x128xf32> to vector<16xf32>
    %96 = vector.shape_cast %95 : vector<16xf32> to vector<16x1xf32>
    %cst_48 = arith.constant 1.280000e+02 : f32
    %97 = vector.broadcast %cst_48 : f32 to vector<16x1xf32>
    %98 = arith.divf %96, %97 : vector<16x1xf32>
    %99 = vector.broadcast %98 : vector<16x1xf32> to vector<16x128xf32>
    %100 = arith.subf %92, %99 : vector<16x128xf32>
    %101 = arith.mulf %100, %100 : vector<16x128xf32>
    %cst_49 = arith.constant dense<0.000000e+00> : vector<16xf32>
    %102 = vector.multi_reduction <add>, %101, %cst_49 [1] : vector<16x128xf32> to vector<16xf32>
    %103 = vector.shape_cast %102 : vector<16xf32> to vector<16x1xf32>
    %cst_50 = arith.constant 1.280000e+02 : f32
    %104 = vector.broadcast %cst_50 : f32 to vector<16x1xf32>
    %105 = arith.divf %103, %104 : vector<16x1xf32>
    %106 = vector.broadcast %98 : vector<16x1xf32> to vector<16x128xf32>
    %107 = arith.subf %92, %106 : vector<16x128xf32>
    %cst_51 = arith.constant 9.99999974E-6 : f32
    %108 = vector.broadcast %cst_51 : f32 to vector<16x1xf32>
    %109 = arith.addf %105, %108 : vector<16x1xf32>
    %110 = math.rsqrt %109 : vector<16x1xf32>
    %111 = vector.broadcast %110 : vector<16x1xf32> to vector<16x128xf32>
    %112 = arith.mulf %107, %111 : vector<16x128xf32>
    %113 = vector.broadcast %93 : vector<1x128xf32> to vector<16x128xf32>
    %114 = arith.mulf %112, %113 : vector<16x128xf32>
    %115 = vector.broadcast %94 : vector<1x128xf32> to vector<16x128xf32>
    %116 = arith.addf %114, %115 : vector<16x128xf32>
    %c0_52 = arith.constant 0 : index
    %c0_53 = arith.constant 0 : index
    %c0_54 = arith.constant 0 : index
    %117 = vector.load %arg13[%c0_52, %c0_53, %c0_54] : memref<1x16x128xf32, #tpu.memory_space<vmem>>, vector<1x16x128xf32>
    %118 = vector.shape_cast %117 : vector<1x16x128xf32> to vector<16x128xf32>
    %119 = vector.shape_cast %116 : vector<16x128xf32> to vector<1x16x128xf32>
    tpu.vector_store %arg13[%c0_52, %c0_53, %c0_54], %119 {strides = array<i32>} : memref<1x16x128xf32, #tpu.memory_space<vmem>>, vector<1x16x128xf32>,
    return
  }
  func.func @transform_0(%arg0: i32) -> (i32, i32, i32) {
    %c0_i32 = arith.constant 0 : i32
    %c0_i32_0 = arith.constant 0 : i32
    %c0_i32_1 = arith.constant 0 : i32
    return %arg0, %c0_i32, %c0_i32_0 : i32, i32, i32
  }
  func.func @transform_1(%arg0: i32) -> (i32, i32) {
    %c0_i32 = arith.constant 0 : i32
    %c0_i32_0 = arith.constant 0 : i32
    %c0_i32_1 = arith.constant 0 : i32
    return %c0_i32, %c0_i32_0 : i32, i32
  }
  func.func @transform_2(%arg0: i32) -> (i32, i32) {
    %c0_i32 = arith.constant 0 : i32
    %c0_i32_0 = arith.constant 0 : i32
    %c0_i32_1 = arith.constant 0 : i32
    return %c0_i32, %c0_i32_0 : i32, i32
  }
  func.func @transform_3(%arg0: i32) -> (i32, i32) {
    %c0_i32 = arith.constant 0 : i32
    %c0_i32_0 = arith.constant 0 : i32
    %c0_i32_1 = arith.constant 0 : i32
    return %c0_i32, %c0_i32_0 : i32, i32
  }
  func.func @transform_4(%arg0: i32) -> (i32, i32) {
    %c0_i32 = arith.constant 0 : i32
    %c0_i32_0 = arith.constant 0 : i32
    %c0_i32_1 = arith.constant 0 : i32
    return %c0_i32, %c0_i32_0 : i32, i32
  }
  func.func @transform_5(%arg0: i32) -> (i32, i32) {
    %c0_i32 = arith.constant 0 : i32
    %c0_i32_0 = arith.constant 0 : i32
    %c0_i32_1 = arith.constant 0 : i32
    return %c0_i32, %c0_i32_0 : i32, i32
  }
  func.func @transform_6(%arg0: i32) -> (i32, i32) {
    %c0_i32 = arith.constant 0 : i32
    %c0_i32_0 = arith.constant 0 : i32
    %c0_i32_1 = arith.constant 0 : i32
    return %c0_i32, %c0_i32_0 : i32, i32
  }
  func.func @transform_7(%arg0: i32) -> (i32, i32) {
    %c0_i32 = arith.constant 0 : i32
    %c0_i32_0 = arith.constant 0 : i32
    %c0_i32_1 = arith.constant 0 : i32
    return %c0_i32, %c0_i32_0 : i32, i32
  }
  func.func @transform_8(%arg0: i32) -> (i32, i32) {
    %c0_i32 = arith.constant 0 : i32
    %c0_i32_0 = arith.constant 0 : i32
    %c0_i32_1 = arith.constant 0 : i32
    return %c0_i32, %c0_i32_0 : i32, i32
  }
  func.func @transform_9(%arg0: i32) -> (i32, i32) {
    %c0_i32 = arith.constant 0 : i32
    %c0_i32_0 = arith.constant 0 : i32
    %c0_i32_1 = arith.constant 0 : i32
    return %c0_i32, %c0_i32_0 : i32, i32
  }
  func.func @transform_10(%arg0: i32) -> (i32, i32) {
    %c0_i32 = arith.constant 0 : i32
    %c0_i32_0 = arith.constant 0 : i32
    %c0_i32_1 = arith.constant 0 : i32
    return %c0_i32, %c0_i32_0 : i32, i32
  }
  func.func @transform_11(%arg0: i32) -> (i32, i32) {
    %c0_i32 = arith.constant 0 : i32
    %c0_i32_0 = arith.constant 0 : i32
    %c0_i32_1 = arith.constant 0 : i32
    return %c0_i32, %c0_i32_0 : i32, i32
  }
  func.func @transform_12(%arg0: i32) -> (i32, i32, i32) {
    %c0_i32 = arith.constant 0 : i32
    %c0_i32_0 = arith.constant 0 : i32
    %c0_i32_1 = arith.constant 0 : i32
    return %arg0, %c0_i32, %c0_i32_0 : i32, i32, i32
  }
}

</mosaic_0001>

<bundles_post_ra>
// kernel: tpu_custom_call.1
= control target key start
LH: loop header
LB: loop body
LE: loop exit
PB: predicated region body
PF: predicated region fallthrough
CT: control target
= control target key end

     0   :  { %s3174_s0 = inlined_call_operand.hbm [shape: f32[2,16,128], index: 0, kind: input, shape index: {}]   ;;  %s3175_s1 = inlined_call_operand.hbm [shape: f32[16,16], index: 1, kind: input, shape index: {}]   ;;  %s3176_s2 = inlined_call_operand.hbm [shape: f32[128,128], index: 2, kind: input, shape index: {}]   ;;  %s3177_s3 = inlined_call_operand.vmem [shape: f32[1,128], index: 3, kind: input, shape index: {}]   ;;  %s3178_s4 = inlined_call_operand.hbm [shape: f32[128,128], index: 4, kind: input, shape index: {}]   ;;  %s3179_s5 = inlined_call_operand.vmem [shape: f32[1,128], index: 5, kind: input, shape index: {}]   ;;  %s3180_s6 = inlined_call_operand.hbm [shape: f32[128,128], index: 6, kind: input, shape index: {}]   ;;  %s3181_s7 = inlined_call_operand.vmem [shape: f32[1,128], index: 7, kind: input, shape index: {}]   ;;  %s3182_s8 = inlined_call_operand.hbm [shape: f32[128,128], index: 8, kind: input, shape index: {}]   ;;  %s3183_s9 = inlined_call_operand.vmem [shape: f32[1,128], index: 9, kind: input, shape index: {}]   ;;  %s3184_s10 = inlined_call_operand.vmem [shape: f32[1,128], index: 10, kind: input, shape index: {}]   ;;  %s3185_s11 = inlined_call_operand.vmem [shape: f32[1,128], index: 11, kind: input, shape index: {}]   ;;  %s3186_s12 = inlined_call_operand.hbm [shape: f32[2,16,128], index: 12, kind: output, shape index: {}]  }
   0x1   :  { %3193 = sst [smem:[#allocation20_spill]] %s3175_s1 }
   0x2   :  { %3194 = sst [smem:[#allocation21_spill]] %s3176_s2 }
   0x3   :  { %3195 = sst [smem:[#allocation22_spill]] %s3178_s4 }
   0x4   :  { %3196 = sst [smem:[#allocation23_spill]] %s3180_s6 }
   0x5   :  { %3197 = sst [smem:[#allocation24_spill]] %s3182_s8 }
   0x6   :  { %17 = vsyncpa [#allocation3], 0 }
   0x7   :  { %19 = vsyncpa [#allocation3 + $0x1], 0 }
   0x8   :  { %20 = vsyncpa [#allocation6], 0 }
   0x9   :  { %21 = vsyncpa [#allocation9], 0 }
   0xa   :  { %22 = vsyncpa [#allocation12], 0 }
   0xb   :  { %23 = vsyncpa [#allocation4], 0 }
   0xc   :  { %25 = vsyncpa [#allocation4 + $0x1], 0  ;;  %s2749_s21 = smov 0   ;;  %s2751_s22 = smov 0  }
   0xd   :  { %s2753_s23 = smov 0   ;;  %s2755_s24 = smov 0  }
   0xe LB: > { %s2670_s25 = smov [#allocation5]   ;;  %s2770_s27 = sadd.s32 4294967295, %s2668_s24   ;;  %s2668_s24 = sphi %s2755_s24, %s3228_s24   ;;  %s2664_s23 = sphi %s2753_s23, %s3227_s23   ;;  %s2660_s22 = sphi %s2751_s22, %s3226_s22   ;;  %s2656_s21 = sphi %s2749_s21, %s3225_s21  }
   0xf   : > { %s331_s26 = sshll.u32 %s2670_s25, 4  ;;  %p1924_p0 = scmp.ge.s32.totalorder %s2668_s24, 1  ;;  %s332_s26 = int_to_ptr.vmem [resolvable:$true] %s331_s26 }
  0x10   : > { %p3189_p1 = scmp.eq.s32.totalorder %s2770_s27, 0  ;;  %p319_p2 = scmp.lt.s32.totalorder %s2668_s24, 3 }
  0x11   : > { %s2671_s29 = smov [#allocation8]   ;;  %s2672_s14 = smov [#allocation7]  }
  0x12   : > { %p2775_p3 = pnand %p1924_p0, %p319_p2  ;;  %s360_s30 = sshll.u32 %s2671_s29, 4  ;;  %s2788_s30 = int_to_ptr.vmem [resolvable:$true] %s360_s30 }
  0x13   : > { %s344_s15 = sshll.u32 %s2672_s14, 4  ;;  %s2445_s17 = scalar_lea.vmem %s332_s26, 256  ;;  %s2790_s15 = int_to_ptr.vmem [resolvable:$true] %s344_s15 }
  0x14   : > { %s3198_s28 = scalar_select %p2775_p3, 1, 0 }
  0x15   : > { %p2303_p5 = pneg %p2775_p3  ;;  %p2446_p8 = scmp.ne.s32.totalorder %s332_s26, %s2445_s17 }
  0x16   : > { %p2453_p11 = scmp.lt.s32.totalorder %s332_s26, %s332_s26  ;;  %p2454_p12 = scmp.lt.s32.totalorder %s2445_s17, %s2445_s17 }
  0x17   : > { %p2784_p6 = pnand %p2303_p5, %p3189_p1 }
  0x18   : > { %p2455_p13 = por %p2454_p12, %p2453_p11 }
  0x19   : > { %p2794_p7 = pneg %p2784_p6 }
  0x1b   : > { %p2448_p9 = pnand %p2446_p8, %p2794_p7 }
  0x1d   : > { %p2449_p10 = pneg %p2448_p9 }
  0x1f   : > { %p2456_p0 = pnand %p2455_p13, %p2449_p10 }
  0x21   : > { %2459 = shalt.err (!%p2456_p0)
}
  0x22   : > { %s3187_s18 = smov 128   ;;  %s3188_s19 = smov 8  }
  0x23   : > { %s3201_s1 = sld [smem:[#allocation20_spill]]  ;;  %s2471_s29 = scalar_lea.vmem %s2788_s30, 2048 }
  0x24   : > { %p2472_p2 = scmp.ne.s32.totalorder %s2788_s30, %s2471_s29  ;;  %p2479_p9 = scmp.lt.s32.totalorder %s2788_s30, %s2788_s30 }
  0x25   : > { %p2480_p10 = scmp.lt.s32.totalorder %s2471_s29, %s2471_s29 }
  0x26   : > { %p2474_p5 = pnand %p2472_p2, %p2794_p7 }
  0x27   : > { %p2481_p11 = por %p2480_p10, %p2479_p9 }
  0x28   : > { %p2475_p8 = pneg %p2474_p5 }
  0x29   : > { %2306 = dma.hbm_to_vmem [thread:$0]  (!%p2784_p6), %s3201_s1, 256, %s332_s26, [#allocation6], %s3187_s18, %s3187_s18, %s3188_s19  }
  0x2a   : > { %p2482_p12 = pnand %p2481_p11, %p2475_p8 }
  0x2c   : > { %2485 = shalt.err (!%p2482_p12)
}
  0x2d   : > { %s3202_s4 = sld [smem:[#allocation22_spill]]  ;;  %s2497_s26 = scalar_lea.vmem %s2790_s15, 2048 }
  0x2e   : > { %p2498_p13 = scmp.ne.s32.totalorder %s2790_s15, %s2497_s26  ;;  %p2505_p5 = scmp.lt.s32.totalorder %s2790_s15, %s2790_s15 }
  0x2f   : > { %p2506_p8 = scmp.lt.s32.totalorder %s2497_s26, %s2497_s26 }
  0x30   : > { %p2500_p0 = pnand %p2498_p13, %p2794_p7 }
  0x31   : > { %p2507_p9 = por %p2506_p8, %p2505_p5 }
  0x32   : > { %p2501_p2 = pneg %p2500_p0 }
  0x33   : > { %2312 = dma.hbm_to_vmem [thread:$0]  (!%p2784_p6), %s3202_s4, 2048, %s2788_s30, [#allocation9], %s3187_s18, %s3187_s18, %s3188_s19  }
  0x34   : > { %p2508_p10 = pnand %p2507_p9, %p2501_p2 }
  0x36   : > { %2511 = shalt.err (!%p2508_p10)
}
  0x37   : > { %s3203_s2 = sld [smem:[#allocation21_spill]]  ;;  %s2675_s30 = smov [#allocation10]  }
  0x38   : > { %s376_s29 = sshll.u32 %s2675_s30, 4  ;;  %s2676_s14 = smov [#allocation11]   ;;  %s377_s29 = int_to_ptr.vmem [resolvable:$true] %s376_s29 }
  0x39   : > { %s392_s17 = sshll.u32 %s2676_s14, 4  ;;  %s2523_s26 = scalar_lea.vmem %s377_s29, 2048  ;;  %s393_s17 = int_to_ptr.vmem [resolvable:$true] %s392_s17 }
  0x3a   : > { %p2524_p11 = scmp.ne.s32.totalorder %s377_s29, %s2523_s26  ;;  %p2531_p0 = scmp.lt.s32.totalorder %s377_s29, %s377_s29 }
  0x3b   : > { %p2532_p2 = scmp.lt.s32.totalorder %s2523_s26, %s2523_s26 }
  0x3c   : > { %p2526_p12 = pnand %p2524_p11, %p2794_p7 }
  0x3d   : > { %2309 = dma.hbm_to_vmem [thread:$0]  (!%p2784_p6), %s3203_s2, 2048, %s2790_s15, [#allocation6], %s3187_s18, %s3187_s18, %s3188_s19  }
  0x3e   : > { %p2527_p13 = pneg %p2526_p12  ;;  %p2533_p5 = por %p2532_p2, %p2531_p0 }
  0x40   : > { %p2534_p8 = pnand %p2533_p5, %p2527_p13 }
  0x42   : > { %2537 = shalt.err (!%p2534_p8)
}
  0x43   : > { %s3204_s6 = sld [smem:[#allocation23_spill]]  ;;  %s2549_s25 = scalar_lea.vmem %s393_s17, 2048 }
  0x44   : > { %p2550_p9 = scmp.ne.s32.totalorder %s393_s17, %s2549_s25  ;;  %p2557_p12 = scmp.lt.s32.totalorder %s393_s17, %s393_s17 }
  0x45   : > { %p2558_p0 = scmp.lt.s32.totalorder %s2549_s25, %s2549_s25 }
  0x46   : > { %p2552_p10 = pnand %p2550_p9, %p2794_p7 }
  0x47   : > { %p2559_p13 = por %p2558_p0, %p2557_p12 }
  0x48   : > { %p2553_p11 = pneg %p2552_p10 }
  0x49   : > { %2315 = dma.hbm_to_vmem [thread:$0]  (!%p2784_p6), %s3204_s6, 2048, %s377_s29, [#allocation9], %s3187_s18, %s3187_s18, %s3188_s19  }
  0x4a   : > { %p2560_p2 = pnand %p2559_p13, %p2553_p11 }
  0x4c   : > { %2563 = shalt.err (!%p2560_p2)
}
  0x4d   : > { %s3205_s8 = sld [smem:[#allocation24_spill]]  ;;  %s1923_s13 = sadd.s32 4294967294, %s2668_s24  }
  0x4e   : > { %s2860_s16 = sadd.s32 1, %s2668_s24   ;;  %s38_s29 = sadd.s32 1, %s2664_s23 }
  0x4f   : > { %s35_s26 = ssub.s32 %s2668_s24, %s2860_s16  ;;  %p45_p7 = scmp.ne.s32.totalorder %s2664_s23, %s2660_s22 }
  0x50   : > { %p36_p5 = scmp.eq.s32.totalorder %s35_s26, 0  ;;  %p46_p8 = scmp.eq.s32.totalorder %s2668_s24, 0 }
  0x51   : > { %p51_p9 = scmp.ne.s32.totalorder %s2660_s22, %s2656_s21  ;;  %p306_p10 = scmp.eq.s32.totalorder %s2770_s27, 1 }
  0x52   : > { %s2872_s15 = scalar_select %p36_p5, %s2664_s23, %s38_s29  }
  0x53   : > { %2318 = dma.hbm_to_vmem [thread:$0]  (!%p2784_p6), %s3205_s8, 2048, %s393_s17, [#allocation12], %s3187_s18, %s3187_s18, %s3188_s19  }
  0x54   : > { %3206 = sst [smem:[#allocation19_spill]] %s2872_s15  ;;  %p47_p11 = por %p46_p8, %p45_p7 }
  0x55   : > { %p2876_p12 = por %p3189_p1, %p51_p9  ;;  %p2880_p6 = por %p306_p10, %p45_p7 }
  0x56   : > { %p312_p0 = scmp.eq.s32.totalorder %s1923_s13, 1  ;;  %p2332_p13 = scmp.lt.s32.totalorder %s2668_s24, 2 }
  0x57   : > { %s3207_s20 = scalar_select %p2876_p12, 1, 0 }
  0x58   : > { %s3208_s17 = scalar_select %p2880_p6, 1, 0 }
  0x59   : > { %s415_s25 = sand.u32 1, %s2664_s23   ;;  %p2886_p2 = por %p312_p0, %p51_p9 }
  0x5a   : > { %s1931_s14 = sshll.u32 %s415_s25, 4  ;;  %s1977_s29 = sshll.u32 %s2668_s24, 8 }
  0x5b   : > { %s3209_s30 = scalar_select %p2886_p2, 1, 0 }
  0x5c   : > { %s2894_s19 = scalar_lea.hbm %s3174_s0, %s1977_s29  ;;  %s419_s1 = scalar_lea.vmem [#allocation2], %s1931_s14 }
  0x5d   : > { %s426_s2 = sshll.u32 %s419_s1, 4  ;;  %p2896_p7 = pnand %p2332_p13, %p47_p11  ;;  %s2900_s2 = int_to_ptr.vmem [resolvable:$true] %s426_s2 }
  0x5e   : > { %s2902_s4 = scalar_lea.sflag [#allocation3], %s415_s25  ;;  %s2564_s6 = scalar_lea.hbm %s2894_s19, 256 }
  0x5f   : > { %p2565_p5 = scmp.ne.s32.totalorder %s2894_s19, %s2564_s6  ;;  %p2566_p8 = pneg %p2896_p7 }
  0x60   : > { %s2569_s14 = scalar_lea.hbm %s3174_s0, 512  ;;  %p2570_p11 = scmp.lt.s32.totalorder %s2894_s19, %s3174_s0 }
  0x61   : > { %p2567_p9 = pnand %p2566_p8, %p2565_p5  ;;  %p2571_p0 = scmp.lt.s32.totalorder %s2569_s14, %s2564_s6 }
  0x63   : > { %p2568_p10 = pneg %p2567_p9  ;;  %p2572_p13 = por %p2571_p0, %p2570_p11 }
  0x65   : > { %p2573_p4 = pnand %p2572_p13, %p2568_p10 }
  0x67   : > { %2576 = shalt.err (!%p2573_p4)
}
  0x68   : > { %s2577_s25 = scalar_lea.vmem %s2900_s2, 256  ;;  %s2677_s8 = smov [#allocation2]  }
  0x69   : > { %p2578_p1 = scmp.ne.s32.totalorder %s2900_s2, %s2577_s25  ;;  %s2582_s15 = sshll.u32 %s2677_s8, 4  ;;  %s2583_s15 = int_to_ptr.vmem [resolvable:$false] %s2582_s15 }
  0x6a   : > { %s2584_s18 = scalar_lea.vmem %s2583_s15, 512  ;;  %p2585_p9 = scmp.lt.s32.totalorder %s2900_s2, %s2583_s15 }
  0x6b   : > { %p2580_p2 = pnand %p2578_p1, %p2566_p8  ;;  %p2586_p6 = scmp.lt.s32.totalorder %s2584_s18, %s2577_s25 }
  0x6d   : > { %p2581_p5 = pneg %p2580_p2  ;;  %p2587_p12 = por %p2586_p6, %p2585_p9 }
  0x6f   : > { %p2588_p3 = pnand %p2587_p12, %p2581_p5 }
  0x71   : > { %2591 = shalt.err (!%p2588_p3)
}
  0x72   : > { %s3211_s6 = smov 8   ;;  %s3212_s29 = smov 128  }
  0x73   : > { %2322 = dma.hbm_to_vmem [thread:$0]  (!%p2896_p7), %s2894_s19, 256, %s2900_s2, %s2902_s4, %s3212_s29, %s3212_s29, %s3211_s6  }
  0x74   : > { %p3213_p1 = scmp.ne.s32.totalorder %s3198_s28, 0 }
  0x75   : > { %s2929_s8 = sand.u32 (!%p3213_p1), 1, %s2660_s22   ;;  %p3214_p3 = scmp.ne.s32.totalorder (!%p3213_p1), %s3207_s20, 0 }
  0x76   : > { %438 = sbr.rel (%p3213_p1) target bundleno = 3295 (0xcdf), region = 68  ;;  %s1935_s15 = sshll.u32 (!%p3213_p1), %s2929_s8, 4 }
  0x77   : > { %s441_s14 = scalar_lea.sflag (!%p3213_p1), [#allocation3], %s2929_s8  ;;  %s2935_s13 = scalar_lea.vmem (!%p3213_p1), [#allocation2], %s1935_s15 }
  0x7b   : > { %2635 = dma.done.wait (%p3214_p3), %s441_s14, 256  }
  0x7c   : > { %2637 = vsyncadd (%p3214_p3), %s441_s14, 4294967040  ;;  %p3215_p4 = scmp.eq.s32.totalorder %s2770_s27, 0 }
  0x7e   : > { %2639 = dma.done.wait (%p3215_p4), [#allocation6], 2304   ;;  %p3216_p12 = pmov %p3215_p4 }
  0x7f   : > { %p3217_p6 = pmov %p3215_p4 }
  0x80   : > { %2641 = vsyncadd (%p3216_p12), [#allocation6], 4294964992 }
  0x81   : > { %2643 = dma.done.wait (%p3217_p6), [#allocation9], 4096   ;;  %p3218_p2 = pmov %p3215_p4 }
  0x83   : > { %2645 = vsyncadd (%p3218_p2), [#allocation9], 4294963200  ;;  %p3219_p7 = pmov %p3218_p2 }
  0x84   : > { %p3220_p8 = pmov %p3218_p2 }
  0x85   : > { %2647 = dma.done.wait (%p3219_p7), [#allocation12], 2048  }
  0x86   : > { %2649 = vsyncadd (%p3220_p8), [#allocation12], 4294965248  ;;  %v622_v0 = vld [vmem:[#allocation8 + $0x78] sm:$0xff]  ;;  %v621_v1 = vld [vmem:[#allocation8 + $0x70] sm:$0xff]  ;;  %vm803_vm0 = vcmask 261120   ;;  %s2678_s20 = smov 96  }
  0x87   : > { %v524_v2 = vld [vmem:[#allocation7 + $0x78] sm:$0xff]  ;;  %2118 = vmatprep.subr.mxu1 %v622_v0  ;;  %v523_v3 = vld [vmem:[#allocation7 + $0x70] sm:$0xff]  ;;  %v620_v4 = vld [vmem:[#allocation8 + $0x68] sm:$0xff]  ;;  %vm895_vm1 = vcmask 130048   ;;  %s2679_s25 = smov 64   ;;  %s2680_s18 = smov 32  }
  0x88   : > { %2083 = vmatprep.subr.mxu0 %v524_v2  ;;  %2119 = vmatpush3.msra.mxu1 %v622_v0  ;;  %v522_v5 = vld [vmem:[#allocation7 + $0x68] sm:$0xff]  ;;  %v619_v6 = vld [vmem:[#allocation8 + $0x60] sm:$0xff]  ;;  %v618_v8 = vld [vmem:[#allocation8 + $0x58] sm:$0xff]  ;;  %vm1639_vm2 = vcmask 523264   ;;  %vm1642_vm3 = vcmask 785408   ;;  %s1978_s28 = sshll.u32 %s2770_s27, 8 }
  0x89   : > { %2084 = vmatpush3.msra.mxu0 %v524_v2  ;;  %2120 = vmatprep.subr.mxu1 %v621_v1  ;;  %v521_v7 = vld [vmem:[#allocation7 + $0x60] sm:$0xff]  ;;  %v520_v9 = vld [vmem:[#allocation7 + $0x58] sm:$0xff]  ;;  %v617_v10 = vld [vmem:[#allocation8 + $0x50] sm:$0xff]  ;;  %s504_s19 = scalar_lea.vmem [#allocation13], %s1935_s15  ;;  %p3221_p11 = scmp.ne.s32.totalorder %s3208_s17, 0 }
  0x8a   : > { %2085 = vmatprep.subr.mxu0 %v523_v3  ;;  %2121 = vmatpush3.msra.mxu1 %v621_v1  ;;  %v519_v11 = vld [vmem:[#allocation7 + $0x50] sm:$0xff]  ;;  %v616_v12 = vld [vmem:[#allocation8 + $0x48] sm:$0xff]  ;;  %v615_v14 = vld [vmem:[#allocation8 + $0x40] sm:$0xff]  ;;  %s2681_s27 = smov [#allocation13]  }
  0x8b   : > { %2086 = vmatpush3.msra.mxu0 %v523_v3  ;;  %2122 = vmatprep.subr.mxu1 %v620_v4  ;;  %v518_v13 = vld [vmem:[#allocation7 + $0x48] sm:$0xff]  ;;  %v517_v15 = vld [vmem:[#allocation7 + $0x40] sm:$0xff]  ;;  %v614_v16 = vld [vmem:[#allocation8 + $0x38] sm:$0xff]  ;;  %s2596_s15 = sshll.u32 %s2681_s27, 4  ;;  %s2597_s15 = int_to_ptr.vmem [resolvable:$false] %s2596_s15 }
  0x8c   : > { %2087 = vmatprep.subr.mxu0 %v522_v5  ;;  %2123 = vmatpush3.msra.mxu1 %v620_v4  ;;  %v516_v17 = vld [vmem:[#allocation7 + $0x38] sm:$0xff]  ;;  %v613_v18 = vld [vmem:[#allocation8 + $0x30] sm:$0xff]  ;;  %v612_v20 = vld [vmem:[#allocation8 + $0x28] sm:$0xff]  ;;  %s2598_s29 = scalar_lea.vmem %s2597_s15, 512 }
  0x8d   : > { %2088 = vmatpush3.msra.mxu0 %v522_v5  ;;  %2124 = vmatprep.subr.mxu1 %v619_v6  ;;  %v515_v19 = vld [vmem:[#allocation7 + $0x30] sm:$0xff]  ;;  %v514_v21 = vld [vmem:[#allocation7 + $0x28] sm:$0xff]  ;;  %v611_v22 = vld [vmem:[#allocation8 + $0x20] sm:$0xff] }
  0x8e   : > { %2089 = vmatprep.subr.mxu0 %v521_v7  ;;  %2125 = vmatpush3.msra.mxu1 %v619_v6  ;;  %v513_v23 = vld [vmem:[#allocation7 + $0x20] sm:$0xff]  ;;  %v610_v24 = vld [vmem:[#allocation8 + $0x18] sm:$0xff]  ;;  %v609_v26 = vld [vmem:[#allocation8 + $0x10] sm:$0xff] }
  0x8f   : > { %2090 = vmatpush3.msra.mxu0 %v521_v7  ;;  %2126 = vmatprep.subr.mxu1 %v618_v8  ;;  %v512_v25 = vld [vmem:[#allocation7 + $0x18] sm:$0xff]  ;;  %v511_v27 = vld [vmem:[#allocation7 + $0x10] sm:$0xff]  ;;  %v608_v28 = vld [vmem:[#allocation8 + $0x8] sm:$0xff] }
  0x90   : > { %2091 = vmatprep.subr.mxu0 %v520_v9  ;;  %2127 = vmatpush3.msra.mxu1 %v618_v8  ;;  %v510_v29 = vld [vmem:[#allocation7 + $0x8] sm:$0xff]  ;;  %v2954_v30 = vld [vmem:[%s2935_s13] sm:$0xff]  ;;  %v720_v34 = vld [vmem:[#allocation10 + $0x78] sm:$0xff] }
  0x91   : > { %2092 = vmatpush3.msra.mxu0 %v520_v9  ;;  %2128 = vmatprep.subr.mxu1 %v617_v10  ;;  %v607_v31 = vld [vmem:[#allocation8] sm:$0xff]  ;;  %v2958_v33 = vld [vmem:[%s2935_s13 + $0x8] sm:$0xff]  ;;  %v719_v35 = vld [vmem:[#allocation10 + $0x70] sm:$0xff] }
  0x92   : > { %2093 = vmatprep.subr.mxu0 %v519_v11  ;;  %2129 = vmatpush3.msra.mxu1 %v617_v10  ;;  %v509_v32 = vld [vmem:[#allocation7] sm:$0xff]  ;;  %v718_v36 = vld [vmem:[#allocation10 + $0x68] sm:$0xff]  ;;  %v1943_v37 = vld [vmem:[%s3179_s5] ss:$0 sm:$0xff] }
  0x93   : > { %2094 = vmatpush3.msra.mxu0 %v519_v11  ;;  %2130 = vmatprep.subr.mxu1 %v616_v12  ;;  %v717_v38 = vld [vmem:[#allocation10 + $0x60] sm:$0xff]  ;;  %v716_v41 = vld [vmem:[#allocation10 + $0x58] sm:$0xff]  ;;  %v1942_v44 = vld [vmem:[%s3177_s3] ss:$0 sm:$0xff] }
  0x94   : > { %2095 = vmatprep.subr.mxu0 %v518_v13  ;;  %2131 = vmatpush3.msra.mxu1 %v616_v12  ;;  %v715_v47 = vld [vmem:[#allocation10 + $0x50] sm:$0xff]  ;;  %v714_v49 = vld [vmem:[#allocation10 + $0x48] sm:$0xff]  ;;  %v713_v50 = vld [vmem:[#allocation10 + $0x40] sm:$0xff] }
  0x95   : > { %2096 = vmatpush3.msra.mxu0 %v518_v13  ;;  %2132 = vmatprep.subr.mxu1 %v615_v14  ;;  %v712_v52 = vld [vmem:[#allocation10 + $0x38] sm:$0xff]  ;;  %v711_v53 = vld [vmem:[#allocation10 + $0x30] sm:$0xff]  ;;  %v710_v54 = vld [vmem:[#allocation10 + $0x28] sm:$0xff] }
  0x96   : > { %2097 = vmatprep.subr.mxu0 %v517_v15  ;;  %2133 = vmatpush3.msra.mxu1 %v615_v14  ;;  %v709_v55 = vld [vmem:[#allocation10 + $0x20] sm:$0xff]  ;;  %v708_v56 = vld [vmem:[#allocation10 + $0x18] sm:$0xff]  ;;  %v707_v57 = vld [vmem:[#allocation10 + $0x10] sm:$0xff] }
  0x97   : > { %2098 = vmatpush3.msra.mxu0 %v517_v15  ;;  %2134 = vmatprep.subr.mxu1 %v614_v16  ;;  %v706_v58 = vld [vmem:[#allocation10 + $0x8] sm:$0xff]  ;;  %v705_v59 = vld [vmem:[#allocation10] sm:$0xff]  ;;  %v2995_v62 = vld [vmem:[#allocation5] sm:$0xff] }
  0x98   : > { %2099 = vmatprep.subr.mxu0 %v516_v17  ;;  %2135 = vmatpush3.msra.mxu1 %v614_v16  ;;  %v2997_v1 = vld [vmem:[#allocation5 + $0x8] sm:$0xff]  ;;  %v1944_v7 = vld [vmem:[%s3181_s7] ss:$0 sm:$0xff] }
  0x99   : > { %2100 = vmatpush3.msra.mxu0 %v516_v17  ;;  %2136 = vmatprep.subr.mxu1 %v613_v18 }
  0x9a   : > { %2101 = vmatprep.subr.mxu0 %v515_v19  ;;  %2137 = vmatpush3.msra.mxu1 %v613_v18 }
  0x9b   : > { %2102 = vmatpush3.msra.mxu0 %v515_v19  ;;  %2138 = vmatprep.subr.mxu1 %v612_v20 }
  0x9c   : > { %2103 = vmatprep.subr.mxu0 %v514_v21  ;;  %2139 = vmatpush3.msra.mxu1 %v612_v20 }
  0x9d   : > { %2104 = vmatpush3.msra.mxu0 %v514_v21  ;;  %2140 = vmatprep.subr.mxu1 %v611_v22 }
  0x9e   : > { %2105 = vmatprep.subr.mxu0 %v513_v23  ;;  %2141 = vmatpush3.msra.mxu1 %v611_v22 }
  0x9f   : > { %2106 = vmatpush3.msra.mxu0 %v513_v23  ;;  %2142 = vmatprep.subr.mxu1 %v610_v24 }
  0xa0   : > { %2107 = vmatprep.subr.mxu0 %v512_v25  ;;  %2143 = vmatpush3.msra.mxu1 %v610_v24 }
  0xa1   : > { %2108 = vmatpush3.msra.mxu0 %v512_v25  ;;  %2144 = vmatprep.subr.mxu1 %v609_v26 }
  0xa2   : > { %2109 = vmatprep.subr.mxu0 %v511_v27  ;;  %2145 = vmatpush3.msra.mxu1 %v609_v26 }
  0xa3   : > { %2110 = vmatpush3.msra.mxu0 %v511_v27  ;;  %2146 = vmatprep.subr.mxu1 %v608_v28 }
  0xa4   : > { %2111 = vmatprep.subr.mxu0 %v510_v29  ;;  %2147 = vmatpush3.msra.mxu1 %v608_v28 }
  0xa5   : > { %2150 = vmatprep.mubr.f32.mxu1 %v2954_v30  ;;  %2148 = vmatprep.subr.mxu1 %v607_v31 }
  0xa6   : > { %2112 = vmatpush3.msra.mxu0 %v510_v29  ;;  %2149 = vmatpush3.msra.mxu1 %v607_v31 }
  0xa7   : > { %2113 = vmatprep.subr.mxu0 %v509_v32  ;;  %2151 = vmatmul.mubr.f32.vlgmr.msra.gmra.mxu1 %v2958_v33 }
  0xa8   : > { %2114 = vmatpush3.msra.mxu0 %v509_v32  ;;  %2115 = vmatprep.mubr.f32.mxu0 %v2954_v30 }
  0xa9   : > { %2116 = vmatmul.mubr.f32.vlgmr.msra.gmra.mxu0 %v2958_v33  ;;  %2153 = vmatprep.subr.mxu0 %v720_v34 }
  0xaa   : > { %2185 = vmatprep.mubr.f32.mxu0 %v2954_v30  ;;  %2154 = vmatpush3.msra.mxu0 %v720_v34 }
  0xab   : > { %2155 = vmatprep.subr.mxu0 %v719_v35 }
  0xac   : > { %2156 = vmatpush3.msra.mxu0 %v719_v35 }
  0xad   : > { %2157 = vmatprep.subr.mxu0 %v718_v36 }
  0xae   : > { %2158 = vmatpush3.msra.mxu0 %v718_v36 }
  0xaf   : > { %2159 = vmatprep.subr.mxu0 %v717_v38 }
  0xb0   : > { %2160 = vmatpush3.msra.mxu0 %v717_v38 }
  0xb1   : > { %2161 = vmatprep.subr.mxu0 %v716_v41 }
  0xb2   : > { %2162 = vmatpush3.msra.mxu0 %v716_v41 }
  0xb3   : > { %2163 = vmatprep.subr.mxu0 %v715_v47 }
  0xb4   : > { %2164 = vmatpush3.msra.mxu0 %v715_v47 }
  0xb5   : > { %2165 = vmatprep.subr.mxu0 %v714_v49 }
  0xb6   : > { %2166 = vmatpush3.msra.mxu0 %v714_v49 }
  0xb7   : > { %2167 = vmatprep.subr.mxu0 %v713_v50 }
  0xb8   : > { %2168 = vmatpush3.msra.mxu0 %v713_v50 }
  0xb9   : > { %2169 = vmatprep.subr.mxu0 %v712_v52 }
  0xba   : > { %2170 = vmatpush3.msra.mxu0 %v712_v52 }
  0xbb   : > { %2171 = vmatprep.subr.mxu0 %v711_v53 }
  0xbc   : > { %2172 = vmatpush3.msra.mxu0 %v711_v53 }
  0xbd   : > { %2173 = vmatprep.subr.mxu0 %v710_v54 }
  0xbe   : > { %2174 = vmatpush3.msra.mxu0 %v710_v54 }
  0xbf   : > { %2175 = vmatprep.subr.mxu0 %v709_v55 }
  0xc0   : > { %2176 = vmatpush3.msra.mxu0 %v709_v55 }
  0xc1   : > { %2177 = vmatprep.subr.mxu0 %v708_v56 }
  0xc2   : > { %2178 = vmatpush3.msra.mxu0 %v708_v56 }
  0xc3   : > { %2179 = vmatprep.subr.mxu0 %v707_v57 }
  0xc4   : > { %2180 = vmatpush3.msra.mxu0 %v707_v57 }
  0xc5   : > { %2181 = vmatprep.subr.mxu0 %v706_v58 }
  0xc6   : > { %2182 = vmatpush3.msra.mxu0 %v706_v58 }
  0xc7   : > { %2183 = vmatprep.subr.mxu0 %v705_v59 }
  0xc8   : > { %2184 = vmatpush3.msra.mxu0 %v705_v59 }
  0xc9   : > { %2186 = vmatmul.mubr.f32.vlgmr.msra.gmra.mxu0 %v2958_v33 }
 0x167   : > { %v2152_v39 = vpop.f32.mrf.mxu1 }
 0x168   : > { %v2967_v40 = vadd.f32 %v2152_v39, %v1943_v37 }
 0x169   : > { %v696_v42 = vpop.f32.mrf.mxu1  ;;  %v2117_v43 = vpop.f32.mrf.mxu0 }
 0x16a   : > { %v2972_v45 = vadd.f32 %v1943_v37, %v696_v42  ;;  %2188 = vmatprep.subr.msk.mxu1 %vm803_vm0, %v2967_v40  ;;  %v2988_v51 = vadd.f32 %v2117_v43, %v1942_v44 }
 0x16b   : > { %2189 = vmatpush3.xpose.msk.msra.mxu1 %vm803_vm0, %v2967_v40  ;;  %v598_v46 = vpop.f32.mrf.mxu0 }
 0x16c   : > { %1003 = vrot.lane.b32.xlu1 %v2972_v45, %s2678_s20  ;;  %v2980_v48 = vadd.f32 %v1942_v44, %v598_v46  ;;  %2190 = vmatprep.subr.msk.mxu1 %vm803_vm0, %v2972_v45 }
 0x16e   : > { %2192 = vmatprep.mubr.msk.f32.mxu1 %vm803_vm0, %v2980_v48 }
 0x16f   : > { %2191 = vmatpush3.xpose.msk.msra.mxu1 %vm803_vm0, %v2972_v45 }
 0x170   : > { %999 = vrot.lane.b32.xlu1 %v2980_v48, %s2678_s20 }
 0x172   : > { %2193 = vmatmul.mubr.msk.f32.vlgmr.msra.gmra.mxu1 %vm803_vm0, %v2988_v51 }
 0x189   : > { %v2187_v6 = vpop.f32.mrf.mxu0 }
 0x18a   : > { %v3006_v8 = vadd.f32 %v2187_v6, %v1944_v7 }
 0x18b   : > { %v794_v9 = vpop.f32.mrf.mxu0 }
 0x18c   : > { %v3008_v10 = vadd.f32 %v1944_v7, %v794_v9  ;;  %2195 = vmatprep.subr.mxu1 %v3006_v8 }
 0x18d   : > { %2196 = vmatpush3.msra.mxu1 %v3006_v8 }
 0x18e   : > { %2197 = vmatprep.subr.mxu1 %v3008_v10 }
 0x18f   : > { %2198 = vmatpush3.msra.mxu1 %v3008_v10 }
 0x1de   : > { %v1004_v22 = vpop.permute.xlu1 %1003 }
 0x1e2   : > { %v1000_v23 = vpop.permute.xlu1 %999 }
 0x232   : > { %v2194_v60 = vpop.f32.mrf.mxu1 }
 0x233   : > { %v892_v63 = vmul.f32 0.17677669, %v2194_v60 }
 0x234   : > { %v882_v61 = vpop.f32.mrf.mxu1 }
 0x235   : > { %v891_v0 = vmul.f32 0.17677669, %v882_v61  ;;  %v894_v4 = vadd.f32 %v892_v63, %v2997_v1 }
 0x237   : > { %v893_v2 = vadd.f32 %v891_v0, %v2995_v62  ;;  %v899_v5 = vsel %vm895_vm1, %v894_v4, -inf }
 0x239   : > { %v896_v3 = vsel %vm895_vm1, %v893_v2, -inf }
 0x23a   : > { %897 = vmax.xlane.f32.xlu0 %v896_v3 }
 0x23e   : > { %900 = vmax.xlane.f32.xlu0 %v899_v5 }
 0x254   : > { %1005 = vrot.lane.b32.xlu0 %v2967_v40, %s2678_s20 }
 0x2c3   : > { %v898_v11 = vpop.xlane.xlu0 %897 }
 0x2c4   : > { %v902_v12 = vsub.f32 %v893_v2, %v898_v11 }
 0x2c6   : > { %v904_v15 = vmul.f32 1.442695, %v902_v12 }
 0x2c7   : > { %v901_v13 = vpop.xlane.xlu0 %900 }
 0x2c8   : > { %v903_v14 = vsub.f32 %v894_v4, %v901_v13 }
 0x2ca   : > { %v906_v16 = vmul.f32 1.442695, %v903_v14 }
 0x2cb   : > { %v1006_v17 = vpop.permute.xlu0 %1005 }
 0x2cc   : > { %2398 = vpow2.f32 %v906_v16  ;;  %2202 = vmatprep.subr.msk.mxu1 %vm803_vm0, %v1006_v17 }
 0x2cd   : > { %2400 = vpow2.f32 %v904_v15 }
 0x2d9   : > { %v2399_v18 = vpop.eup %2398 }
 0x2da   : > { %v911_v19 = vsel %vm895_vm1, %v2399_v18, 0.0  ;;  %v2401_v20 = vpop.eup %2400 }
 0x2db   : > { %912 = vadd.xlane.f32.xlu1 %v911_v19  ;;  %v908_v21 = vsel %vm895_vm1, %v2401_v20, 0.0 }
 0x2df   : > { %909 = vadd.xlane.f32.xlu1 %v908_v21 }
 0x2f0   : > { %1001 = vrot.lane.b32.xlu1 %v2988_v51, %s2678_s20 }
 0x364   : > { %v913_v24 = vpop.xlane.xlu1 %912 }
 0x365   : > { %2402 = vrcp.f32 %v913_v24 }
 0x368   : > { %v910_v25 = vpop.xlane.xlu1 %909 }
 0x369   : > { %2404 = vrcp.f32 %v910_v25 }
 0x36c   : > { %v1002_v31 = vpop.permute.xlu1 %1001 }
 0x372   : > { %v2403_v26 = vpop.eup %2402 }
 0x373   : > { %v917_v29 = vmul.f32 %v2403_v26, %v2399_v18 }
 0x376   : > { %v2405_v27 = vpop.eup %2404 }
 0x377   : > { %v915_v28 = vmul.f32 %v2405_v27, %v2401_v20 }
 0x379   : > { %2199 = vmatprep.mubr.msk.f32.mxu1 %vm895_vm1, %v915_v28 }
 0x37a   : > { %2200 = vmatmul.mubr.msk.f32.vlgmr.msra.gmra.mxu1 %vm895_vm1, %v917_v29 }
 0x37b   : > { %2203 = vmatpush3.xpose.msk.msra.mxu1 %vm803_vm0, %v1006_v17  ;;  %2206 = vmatprep.mubr.msk.f32.mxu1 %vm803_vm0, %v1000_v23 }
 0x37c   : > { %2204 = vmatprep.subr.msk.mxu1 %vm803_vm0, %v1004_v22 }
 0x37f   : > { %2205 = vmatpush3.xpose.msk.msra.mxu1 %vm803_vm0, %v1004_v22 }
 0x382   : > { %2207 = vmatmul.mubr.msk.f32.vlgmr.msra.gmra.mxu1 %vm803_vm0, %v1002_v31 }
 0x43a   : > { %v3028_v32 = vpop.f32.mrf.mxu1 }
 0x43c   : > { %v3030_v34 = vpop.f32.mrf.mxu1 }
 0x442   : > { %v2208_v35 = vpop.f32.mrf.mxu1 }
 0x443   : > { %v1091_v36 = vmul.f32 0.17677669, %v2208_v35 }
 0x444   : > { %v1081_v37 = vpop.f32.mrf.mxu1 }
 0x445   : > { %v1090_v38 = vmul.f32 0.17677669, %v1081_v37  ;;  %v1093_v39 = vadd.f32 %v1091_v36, %v2997_v1 }
 0x447   : > { %v1097_v41 = vsel %vm895_vm1, %v1093_v39, -inf  ;;  %v1092_v42 = vadd.f32 %v1090_v38, %v2995_v62 }
 0x448   : > { %1098 = vmax.xlane.f32.xlu1 %v1097_v41 }
 0x449   : > { %v1094_v43 = vsel %vm895_vm1, %v1092_v42, -inf }
 0x44a   : > { %1095 = vmax.xlane.f32.xlu0 %v1094_v43 }
 0x459   : > { %1118 = vrot.lane.b32.xlu1 %v3008_v10, %s2678_s20 }
 0x45d   : > { %1211 = vrot.lane.b32.xlu1 %v2967_v40, %s2679_s25 }
 0x461   : > { %1209 = vrot.lane.b32.xlu1 %v2972_v45, %s2679_s25 }
 0x465   : > { %1207 = vrot.lane.b32.xlu1 %v2988_v51, %s2679_s25 }
 0x4d1   : > { %v1099_v44 = vpop.xlane.xlu1 %1098 }
 0x4d2   : > { %v1101_v46 = vsub.f32 %v1093_v39, %v1099_v44 }
 0x4d3   : > { %v1096_v47 = vpop.xlane.xlu0 %1095 }
 0x4d4   : > { %v1104_v49 = vmul.f32 1.442695, %v1101_v46  ;;  %v1100_v50 = vsub.f32 %v1092_v42, %v1096_v47 }
 0x4d5   : > { %v1119_v59 = vpop.permute.xlu1 %1118 }
 0x4d6   : > { %2406 = vpow2.f32 %v1104_v49  ;;  %v1102_v52 = vmul.f32 1.442695, %v1100_v50 }
 0x4d8   : > { %2408 = vpow2.f32 %v1102_v52 }
 0x4d9   : > { %v1212_v61 = vpop.permute.xlu1 %1211 }
 0x4dd   : > { %v1210_v5 = vpop.permute.xlu1 %1209 }
 0x4e1   : > { %v1208_v6 = vpop.permute.xlu1 %1207 }
 0x4e3   : > { %v2407_v53 = vpop.eup %2406 }
 0x4e4   : > { %v1109_v54 = vsel %vm895_vm1, %v2407_v53, 0.0 }
 0x4e5   : > { %v2409_v55 = vpop.eup %2408  ;;  %1110 = vadd.xlane.f32.xlu0 %v1109_v54 }
 0x4e6   : > { %v1106_v56 = vsel %vm895_vm1, %v2409_v55, 0.0 }
 0x4e9   : > { %1107 = vadd.xlane.f32.xlu0 %v1106_v56 }
 0x4ff   : > { %1120 = vrot.lane.b32.xlu0 %v3006_v8, %s2678_s20 }
 0x503   : > { %1205 = vrot.lane.b32.xlu0 %v2980_v48, %s2679_s25 }
 0x56e   : > { %v1111_v57 = vpop.xlane.xlu0 %1110 }
 0x56f   : > { %2410 = vrcp.f32 %v1111_v57 }
 0x572   : > { %v1108_v58 = vpop.xlane.xlu0 %1107 }
 0x573   : > { %2412 = vrcp.f32 %v1108_v58 }
 0x576   : > { %v1121_v60 = vpop.permute.xlu0 %1120 }
 0x577   : > { %2209 = vmatprep.subr.mxu1 %v1121_v60 }
 0x578   : > { %2210 = vmatpush3.msra.mxu1 %v1121_v60 }
 0x579   : > { %2211 = vmatprep.subr.mxu1 %v1119_v59 }
 0x57a   : > { %2212 = vmatpush3.msra.mxu1 %v1119_v59  ;;  %v1206_v4 = vpop.permute.xlu0 %1205 }
 0x57b   : > { %2216 = vmatprep.subr.msk.mxu1 %vm803_vm0, %v1212_v61 }
 0x57c   : > { %v2411_v63 = vpop.eup %2410 }
 0x57d   : > { %v1115_v3 = vmul.f32 %v2411_v63, %v2407_v53 }
 0x580   : > { %v2413_v0 = vpop.eup %2412 }
 0x581   : > { %v1113_v2 = vmul.f32 %v2413_v0, %v2409_v55 }
 0x583   : > { %2213 = vmatprep.mubr.msk.f32.mxu1 %vm895_vm1, %v1113_v2 }
 0x584   : > { %2214 = vmatmul.mubr.msk.f32.vlgmr.msra.gmra.mxu1 %vm895_vm1, %v1115_v3 }
 0x585   : > { %2217 = vmatpush3.xpose.msk.msra.mxu1 %vm803_vm0, %v1212_v61  ;;  %2220 = vmatprep.mubr.msk.f32.mxu1 %vm803_vm0, %v1206_v4 }
 0x586   : > { %2218 = vmatprep.subr.msk.mxu1 %vm803_vm0, %v1210_v5 }
 0x589   : > { %2219 = vmatpush3.xpose.msk.msra.mxu1 %vm803_vm0, %v1210_v5 }
 0x58c   : > { %2221 = vmatmul.mubr.msk.f32.vlgmr.msra.gmra.mxu1 %vm803_vm0, %v1208_v6 }
 0x644   : > { %v3058_v7 = vpop.f32.mrf.mxu1 }
 0x646   : > { %v3060_v9 = vpop.f32.mrf.mxu1 }
 0x647   : > { %v2383_v11 = vpack.i.bf16 %v3058_v7, %v3060_v9 }
 0x64c   : > { %v2222_v12 = vpop.f32.mrf.mxu1 }
 0x64d   : > { %v1297_v13 = vmul.f32 0.17677669, %v2222_v12  ;;  %v1660_v12 = vld [vmem:[#allocation11 + $0x78] sm:$0xff] }
 0x64e   : > { %v1287_v14 = vpop.f32.mrf.mxu1  ;;  %2244 = vmatprep.subr.mxu0 %v1660_v12 }
 0x64f   : > { %v1296_v15 = vmul.f32 0.17677669, %v1287_v14  ;;  %v1299_v16 = vadd.f32 %v1297_v13, %v2997_v1  ;;  %2245 = vmatpush3.msra.mxu0 %v1660_v12  ;;  %v1658_v13 = vld [vmem:[#allocation11 + $0x68] sm:$0xff]  ;;  %v1657_v14 = vld [vmem:[#allocation11 + $0x60] sm:$0xff] }
 0x651   : > { %v1303_v17 = vsel %vm895_vm1, %v1299_v16, -inf  ;;  %v1298_v18 = vadd.f32 %v1296_v15, %v2995_v62  ;;  %v1656_v15 = vld [vmem:[#allocation11 + $0x58] sm:$0xff] }
 0x652   : > { %1304 = vmax.xlane.f32.xlu1 %v1303_v17  ;;  %v1654_v17 = vld [vmem:[#allocation11 + $0x48] sm:$0xff] }
 0x653   : > { %v1300_v19 = vsel %vm895_vm1, %v1298_v18, -inf }
 0x654   : > { %1301 = vmax.xlane.f32.xlu0 %v1300_v19  ;;  %v1652_v19 = vld [vmem:[#allocation11 + $0x38] sm:$0xff] }
 0x663   : > { %1322 = vrot.lane.b32.xlu1 %v3008_v10, %s2679_s25 }
 0x667   : > { %1415 = vrot.lane.b32.xlu1 %v2967_v40, %s2680_s18 }
 0x66b   : > { %1413 = vrot.lane.b32.xlu1 %v2972_v45, %s2680_s18 }
 0x66f   : > { %1411 = vrot.lane.b32.xlu1 %v2988_v51, %s2680_s18 }
 0x6db   : > { %v1305_v20 = vpop.xlane.xlu1 %1304 }
 0x6dc   : > { %v1307_v21 = vsub.f32 %v1299_v16, %v1305_v20  ;;  %v1655_v16 = vld [vmem:[#allocation11 + $0x50] sm:$0xff] }
 0x6dd   : > { %v1302_v22 = vpop.xlane.xlu0 %1301  ;;  %v1651_v20 = vld [vmem:[#allocation11 + $0x30] sm:$0xff] }
 0x6de   : > { %v1310_v23 = vmul.f32 1.442695, %v1307_v21  ;;  %v1306_v24 = vsub.f32 %v1298_v18, %v1302_v22  ;;  %v1653_v18 = vld [vmem:[#allocation11 + $0x40] sm:$0xff]  ;;  %v1650_v21 = vld [vmem:[#allocation11 + $0x28] sm:$0xff] }
 0x6df   : > { %v1323_v29 = vpop.permute.xlu1 %1322  ;;  %v1649_v22 = vld [vmem:[#allocation11 + $0x20] sm:$0xff] }
 0x6e0   : > { %2414 = vpow2.f32 %v1310_v23  ;;  %v1308_v25 = vmul.f32 1.442695, %v1306_v24  ;;  %v1648_v23 = vld [vmem:[#allocation11 + $0x18] sm:$0xff]  ;;  %v1647_v24 = vld [vmem:[#allocation11 + $0x10] sm:$0xff] }
 0x6e2   : > { %2416 = vpow2.f32 %v1308_v25  ;;  %v1646_v25 = vld [vmem:[#allocation11 + $0x8] sm:$0xff] }
 0x6e3   : > { %v1416_v35 = vpop.permute.xlu1 %1415 }
 0x6e7   : > { %v1414_v41 = vpop.permute.xlu1 %1413 }
 0x6eb   : > { %v1412_v42 = vpop.permute.xlu1 %1411 }
 0x6ed   : > { %v2415_v26 = vpop.eup %2414 }
 0x6ee   : > { %v1315_v27 = vsel %vm895_vm1, %v2415_v26, 0.0 }
 0x6ef   : > { %v2417_v28 = vpop.eup %2416  ;;  %1316 = vadd.xlane.f32.xlu0 %v1315_v27 }
 0x6f0   : > { %v1312_v40 = vsel %vm895_vm1, %v2417_v28, 0.0 }
 0x6f3   : > { %1313 = vadd.xlane.f32.xlu0 %v1312_v40 }
 0x709   : > { %1324 = vrot.lane.b32.xlu0 %v3006_v8, %s2679_s25 }
 0x70d   : > { %1409 = vrot.lane.b32.xlu0 %v2980_v48, %s2680_s18 }
 0x778   : > { %v1317_v45 = vpop.xlane.xlu0 %1316 }
 0x779   : > { %2418 = vrcp.f32 %v1317_v45 }
 0x77c   : > { %v1314_v51 = vpop.xlane.xlu0 %1313 }
 0x77d   : > { %2420 = vrcp.f32 %v1314_v51 }
 0x780   : > { %v1325_v31 = vpop.permute.xlu0 %1324 }
 0x781   : > { %2223 = vmatprep.subr.mxu1 %v1325_v31 }
 0x782   : > { %2224 = vmatpush3.msra.mxu1 %v1325_v31 }
 0x783   : > { %2225 = vmatprep.subr.mxu1 %v1323_v29 }
 0x784   : > { %2226 = vmatpush3.msra.mxu1 %v1323_v29  ;;  %v1410_v48 = vpop.permute.xlu0 %1409 }
 0x785   : > { %2230 = vmatprep.subr.msk.mxu1 %vm803_vm0, %v1416_v35 }
 0x786   : > { %v2419_v36 = vpop.eup %2418 }
 0x787   : > { %v1321_v39 = vmul.f32 %v2419_v36, %v2415_v26  ;;  %v1645_v26 = vld [vmem:[#allocation11] sm:$0xff] }
 0x78a   : > { %v2421_v37 = vpop.eup %2420 }
 0x78b   : > { %v1319_v38 = vmul.f32 %v2421_v37, %v2417_v28 }
 0x78d   : > { %2227 = vmatprep.mubr.msk.f32.mxu1 %vm895_vm1, %v1319_v38 }
 0x78e   : > { %2228 = vmatmul.mubr.msk.f32.vlgmr.msra.gmra.mxu1 %vm895_vm1, %v1321_v39 }
 0x78f   : > { %2231 = vmatpush3.xpose.msk.msra.mxu1 %vm803_vm0, %v1416_v35  ;;  %2234 = vmatprep.mubr.msk.f32.mxu1 %vm803_vm0, %v1410_v48 }
 0x790   : > { %2232 = vmatprep.subr.msk.mxu1 %vm803_vm0, %v1414_v41 }
 0x793   : > { %2233 = vmatpush3.xpose.msk.msra.mxu1 %vm803_vm0, %v1414_v41 }
 0x796   : > { %2235 = vmatmul.mubr.msk.f32.vlgmr.msra.gmra.mxu1 %vm803_vm0, %v1412_v42 }
 0x84e   : > { %v2229_v43 = vpop.f32.mrf.mxu1 }
 0x850   : > { %v1400_v44 = vpop.f32.mrf.mxu1 }
 0x851   : > { %v2388_v56 = vpack.i.bf16 %v2229_v43, %v1400_v44 }
 0x856   : > { %v2236_v46 = vpop.f32.mrf.mxu1 }
 0x857   : > { %v1501_v47 = vmul.f32 0.17677669, %v2236_v46 }
 0x858   : > { %v1491_v49 = vpop.f32.mrf.mxu1 }
 0x859   : > { %v1500_v50 = vmul.f32 0.17677669, %v1491_v49  ;;  %v1503_v52 = vadd.f32 %v1501_v47, %v2997_v1  ;;  %v1969_v47 = vld [vmem:[%s3183_s9] ss:$0 sm:$0xff] }
 0x85b   : > { %v1507_v53 = vsel %vm895_vm1, %v1503_v52, -inf  ;;  %v1502_v54 = vadd.f32 %v1500_v50, %v2995_v62 }
 0x85c   : > { %1508 = vmax.xlane.f32.xlu1 %v1507_v53 }
 0x85d   : > { %v1504_v55 = vsel %vm895_vm1, %v1502_v54, -inf }
 0x85e   : > { %1505 = vmax.xlane.f32.xlu0 %v1504_v55 }
 0x86d   : > { %1526 = vrot.lane.b32.xlu1 %v3008_v10, %s2680_s18 }
 0x871   : > { %2384 = vrot.lane.b32.xlu1 %v2383_v11, %s2680_s18 }
 0x875   : > { %2389 = vrot.lane.b32.xlu1 %v2388_v56, %s2679_s25  ;;  %s3129_s25 = scalar_lea.hbm %s3186_s12, %s1978_s28 }
 0x8e5   : > { %v1509_v1 = vpop.xlane.xlu1 %1508 }
 0x8e6   : > { %v1511_v57 = vsub.f32 %v1503_v52, %v1509_v1 }
 0x8e7   : > { %v1506_v58 = vpop.xlane.xlu0 %1505 }
 0x8e8   : > { %v1514_v59 = vmul.f32 1.442695, %v1511_v57  ;;  %v1510_v62 = vsub.f32 %v1502_v54, %v1506_v58 }
 0x8e9   : > { %v1527_v5 = vpop.permute.xlu1 %1526 }
 0x8ea   : > { %2422 = vpow2.f32 %v1514_v59  ;;  %v1512_v60 = vmul.f32 1.442695, %v1510_v62 }
 0x8ec   : > { %2424 = vpow2.f32 %v1512_v60 }
 0x8ed   : > { %v2385_v45 = vpop.permute.xlu1 %2384 }
 0x8ee   : > { %v2387_v29 = vunpack.i.h.bf16 %v2385_v45  ;;  %v2386_v31 = vunpack.i.l.bf16 %v2385_v45 }
 0x8f0   : > { %v1638_v38 = vsel %vm803_vm0, %v3028_v32, %v2387_v29  ;;  %v1637_v41 = vsel %vm803_vm0, %v3030_v34, %v2386_v31 }
 0x8f1   : > { %v2390_v51 = vpop.permute.xlu1 %2389 }
 0x8f2   : > { %v2392_v35 = vunpack.i.h.bf16 %v2390_v51  ;;  %v2391_v36 = vunpack.i.l.bf16 %v2390_v51 }
 0x8f4   : > { %v1640_v42 = vsel %vm1639_vm2, %v1637_v41, %v2391_v36  ;;  %v1641_v43 = vsel %vm1639_vm2, %v1638_v38, %v2392_v35 }
 0x8f7   : > { %v2423_v61 = vpop.eup %2422 }
 0x8f8   : > { %v1519_v63 = vsel %vm895_vm1, %v2423_v61, 0.0 }
 0x8f9   : > { %v2425_v10 = vpop.eup %2424  ;;  %1520 = vadd.xlane.f32.xlu0 %v1519_v63 }
 0x8fa   : > { %v1516_v0 = vsel %vm895_vm1, %v2425_v10, 0.0 }
 0x8fd   : > { %1517 = vadd.xlane.f32.xlu0 %v1516_v0 }
 0x913   : > { %1528 = vrot.lane.b32.xlu0 %v3006_v8, %s2680_s18  ;;  %v1659_v8 = vld [vmem:[#allocation11 + $0x70] sm:$0xff]  ;;  %s1789_s18 = scalar_lea.sflag [#allocation4], %s2929_s8 }
 0x914   : > { %2246 = vmatprep.subr.mxu0 %v1659_v8 }
 0x915   : > { %2247 = vmatpush3.msra.mxu0 %v1659_v8 }
 0x916   : > { %2248 = vmatprep.subr.mxu0 %v1658_v13 }
 0x917   : > { %2249 = vmatpush3.msra.mxu0 %v1658_v13 }
 0x918   : > { %2250 = vmatprep.subr.mxu0 %v1657_v14 }
 0x919   : > { %2251 = vmatpush3.msra.mxu0 %v1657_v14 }
 0x91a   : > { %2252 = vmatprep.subr.mxu0 %v1656_v15 }
 0x91b   : > { %2253 = vmatpush3.msra.mxu0 %v1656_v15 }
 0x91c   : > { %2254 = vmatprep.subr.mxu0 %v1655_v16 }
 0x91d   : > { %2255 = vmatpush3.msra.mxu0 %v1655_v16 }
 0x91e   : > { %2256 = vmatprep.subr.mxu0 %v1654_v17 }
 0x91f   : > { %2257 = vmatpush3.msra.mxu0 %v1654_v17 }
 0x920   : > { %2258 = vmatprep.subr.mxu0 %v1653_v18 }
 0x921   : > { %2259 = vmatpush3.msra.mxu0 %v1653_v18 }
 0x922   : > { %2260 = vmatprep.subr.mxu0 %v1652_v19 }
 0x923   : > { %2261 = vmatpush3.msra.mxu0 %v1652_v19 }
 0x924   : > { %2262 = vmatprep.subr.mxu0 %v1651_v20 }
 0x925   : > { %2263 = vmatpush3.msra.mxu0 %v1651_v20 }
 0x926   : > { %2264 = vmatprep.subr.mxu0 %v1650_v21 }
 0x927   : > { %2265 = vmatpush3.msra.mxu0 %v1650_v21 }
 0x928   : > { %2266 = vmatprep.subr.mxu0 %v1649_v22 }
 0x929   : > { %2267 = vmatpush3.msra.mxu0 %v1649_v22 }
 0x92a   : > { %2268 = vmatprep.subr.mxu0 %v1648_v23 }
 0x92b   : > { %2269 = vmatpush3.msra.mxu0 %v1648_v23 }
 0x92c   : > { %2270 = vmatprep.subr.mxu0 %v1647_v24 }
 0x92d   : > { %2271 = vmatpush3.msra.mxu0 %v1647_v24 }
 0x92e   : > { %2272 = vmatprep.subr.mxu0 %v1646_v25 }
 0x92f   : > { %2273 = vmatpush3.msra.mxu0 %v1646_v25 }
 0x930   : > { %2274 = vmatprep.subr.mxu0 %v1645_v26 }
 0x931   : > { %2275 = vmatpush3.msra.mxu0 %v1645_v26 }
 0x982   : > { %v1521_v2 = vpop.xlane.xlu0 %1520 }
 0x983   : > { %2426 = vrcp.f32 %v1521_v2  ;;  %v1970_v2 = vld [vmem:[%s3184_s10] ss:$0 sm:$0xff] }
 0x986   : > { %v1518_v3 = vpop.xlane.xlu0 %1517 }
 0x987   : > { %2428 = vrcp.f32 %v1518_v3 }
 0x98a   : > { %v1529_v4 = vpop.permute.xlu0 %1528 }
 0x98b   : > { %2237 = vmatprep.subr.mxu1 %v1529_v4 }
 0x98c   : > { %2238 = vmatpush3.msra.mxu1 %v1529_v4  ;;  %v1971_v4 = vld [vmem:[%s3185_s11] ss:$0 sm:$0xff] }
 0x98d   : > { %2239 = vmatprep.subr.mxu1 %v1527_v5 }
 0x98e   : > { %2240 = vmatpush3.msra.mxu1 %v1527_v5 }
 0x990   : > { %v2427_v6 = vpop.eup %2426 }
 0x991   : > { %v1525_v11 = vmul.f32 %v2427_v6, %v2423_v61 }
 0x994   : > { %v2429_v7 = vpop.eup %2428 }
 0x995   : > { %v1523_v9 = vmul.f32 %v2429_v7, %v2425_v10 }
 0x997   : > { %2241 = vmatprep.mubr.msk.f32.mxu1 %vm895_vm1, %v1523_v9 }
 0x998   : > { %2242 = vmatmul.mubr.msk.f32.vlgmr.msra.gmra.mxu1 %vm895_vm1, %v1525_v11 }
 0xa58   : > { %v2243_v27 = vpop.f32.mrf.mxu1 }
 0xa5a   : > { %v1604_v28 = vpop.f32.mrf.mxu1 }
 0xa5b   : > { %v2393_v40 = vpack.i.bf16 %v2243_v27, %v1604_v28 }
 0xa5d   : > { %2394 = vrot.lane.b32.xlu0 %v2393_v40, %s2678_s20  ;;  %s1802_s20 = sshll.u32 %s504_s19, 4  ;;  %s3131_s20 = int_to_ptr.vmem [resolvable:$true] %s1802_s20 }
 0xa5e   : > { %s2592_s6 = scalar_lea.vmem %s3131_s20, 256  ;;  %p2599_p5 = scmp.lt.s32.totalorder %s3131_s20, %s2597_s15 }
 0xa5f   : > { %p2593_p10 = scmp.ne.s32.totalorder %s3131_s20, %s2592_s6  ;;  %p2600_p9 = scmp.lt.s32.totalorder %s2598_s29, %s2592_s6 }
 0xa61   : > { %p2594_p0 = pnand %p2593_p10, %p3221_p11  ;;  %p2601_p1 = por %p2600_p9, %p2599_p5 }
 0xa63   : > { %p2595_p13 = pneg %p2594_p0 }
 0xa65   : > { %p2602_p3 = pnand %p2601_p1, %p2595_p13 }
 0xacf   : > { %v2395_v37 = vpop.permute.xlu0 %2394 }
 0xad0   : > { %v2397_v39 = vunpack.i.h.bf16 %v2395_v37  ;;  %v2396_v48 = vunpack.i.l.bf16 %v2395_v37 }
 0xad2   : > { %v1643_v44 = vsel %vm1642_vm3, %v1640_v42, %v2396_v48  ;;  %v1644_v46 = vsel %vm1642_vm3, %v1641_v43, %v2397_v39 }
 0xad3   : > { %2276 = vmatprep.mubr.f32.mxu0 %v1643_v44 }
 0xad4   : > { %2277 = vmatmul.mubr.f32.vlgmr.msra.gmra.mxu0 %v1644_v46 }
 0xb94   : > { %v2278_v49 = vpop.f32.mrf.mxu0 }
 0xb95   : > { %v1740_v50 = vadd.f32 %v2278_v49, %v1969_v47 }
 0xb96   : > { %v1734_v52 = vpop.f32.mrf.mxu0 }
 0xb97   : > { %v1735_v53 = vadd.f32 %v1969_v47, %v1734_v52  ;;  %v1744_v32 = vadd.f32 %v1740_v50, %v2958_v33 }
 0xb99   : > { %1749 = vadd.xlane.f32.xlu0 %v1744_v32  ;;  %v1743_v54 = vadd.f32 %v1735_v53, %v2954_v30 }
 0xb9b   : > { %1747 = vadd.xlane.f32.xlu1 %v1743_v54 }
 0xc22   : > { %v1750_v34 = vpop.xlane.xlu0 %1749 }
 0xc23   : > { %v1753_v56 = vmul.f32 0.0078125, %v1750_v34 }
 0xc24   : > { %v1748_v55 = vpop.xlane.xlu1 %1747 }
 0xc25   : > { %v1752_v1 = vmul.f32 0.0078125, %v1748_v55  ;;  %v1755_v58 = vsub.f32 %v1744_v32, %v1753_v56 }
 0xc27   : > { %v1754_v57 = vsub.f32 %v1743_v54, %v1752_v1  ;;  %v1757_v62 = vmul.f32 %v1755_v58, %v1755_v58 }
 0xc29   : > { %v1756_v59 = vmul.f32 %v1754_v57, %v1754_v57 }
 0xc2b   : > { %1758 = vadd.xlane.f32.xlu0 %v1756_v59 }
 0xc2f   : > { %1760 = vadd.xlane.f32.xlu0 %v1757_v62 }
 0xcb4   : > { %v1759_v60 = vpop.xlane.xlu0 %1758 }
 0xcb5   : > { %v1762_v61 = vmul.f32 0.0078125, %v1759_v60 }
 0xcb7   : > { %v1764_v63 = vadd.f32 1e-05, %v1762_v61 }
 0xcb8   : > { %v1761_v33 = vpop.xlane.xlu0 %1760 }
 0xcb9   : > { %2430 = vrsqrt.f32 %v1764_v63  ;;  %v1763_v10 = vmul.f32 0.0078125, %v1761_v33 }
 0xcbb   : > { %v1765_v30 = vadd.f32 1e-05, %v1763_v10 }
 0xcbd   : > { %2432 = vrsqrt.f32 %v1765_v30 }
 0xcc6   : > { %v2431_v0 = vpop.eup %2430 }
 0xcc7   : > { %v1768_v3 = vmul.f32 %v2431_v0, %v1754_v57 }
 0xcc9   : > { %v1776_v5 = vmul.f32 %v1970_v2, %v1768_v3 }
 0xcca   : > { %v2433_v6 = vpop.eup %2432 }
 0xccb   : > { %v1784_v7 = vadd.f32 %v1971_v4, %v1776_v5  ;;  %v1769_v9 = vmul.f32 %v2433_v6, %v1755_v58 }
 0xccd   : > { %v1777_v11 = vmul.f32 %v1970_v2, %v1769_v9  ;;  %1786 = vst [vmem:[%s504_s19] sm:$0xff] %v1784_v7 }
 0xccf   : > { %v1785_v12 = vadd.f32 %v1971_v4, %v1777_v11 }
 0xcd1   : > { %1787 = vst [vmem:[%s504_s19 + $0x8] sm:$0xff] %v1785_v12 }
 0xcd2   : > { %2605 = shalt.err (!%p2602_p3)
}
 0xcd3   : > { %s2606_s14 = scalar_lea.hbm %s3129_s25, 256  ;;  %s2610_s4 = scalar_lea.hbm %s3186_s12, 512 }
 0xcd4   : > { %p2607_p4 = scmp.ne.s32.totalorder %s3129_s25, %s2606_s14  ;;  %p2611_p2 = scmp.lt.s32.totalorder %s3129_s25, %s3186_s12 }
 0xcd5   : > { %p2612_p7 = scmp.lt.s32.totalorder %s2610_s4, %s2606_s14 }
 0xcd6   : > { %p2608_p12 = pnand %p2607_p4, %p3221_p11 }
 0xcd7   : > { %p2613_p8 = por %p2612_p7, %p2611_p2 }
 0xcd8   : > { %p2609_p6 = pneg %p2608_p12 }
 0xcda   : > { %p2614_p10 = pnand %p2613_p8, %p2609_p6 }
 0xcdc   : > { %2617 = shalt.err (!%p2614_p10)
}
 0xcdd   : > { %s2682_s1 = smov 128   ;;  %s2683_s26 = smov 8  }
 0xcde   : > { %2301 = dma.vmem_to_hbm [thread:$0]  (%p3221_p11), %s3131_s20, 256, %s3129_s25, %s1789_s18, %s2682_s1, %s2682_s1, %s2683_s26  }
 0xcdf PF: > { %s1817_s6 = sand.u32 1, %s2656_s21   ;;  %p3222_p0 = scmp.ne.s32.totalorder %s3209_s30, 0 }
 0xce0   : > { %p3223_p13 = scmp.ge.s32.totalorder %s2668_s24, 2  ;;  %s1818_s27 = scalar_lea.sflag [#allocation4], %s1817_s6 }
 0xce2   : > { %p2324_p5 = pnand %p3223_p13, %p3222_p0 }
 0xce4   : > { %p2325_p9 = pneg %p2324_p5 }
 0xce6   : > { %2651 = dma.done.wait (%p2325_p9), %s1818_s27, 256  }
 0xce7   : > { %2653 = vsyncadd (%p2325_p9), %s1818_s27, 4294967040  ;;  %s3224_s15 = sld [smem:[#allocation19_spill]]  ;;  %p28_p1 = scmp.ge.s32.totalorder %s2860_s16, 4  }
 0xce8   : > { %s3225_s21 = smov %s2660_s22  ;;  %s3226_s22 = smov %s2664_s23 }
 0xce9   : > { %s3228_s24 = smov %s2860_s16  ;;  %30 = sbr.rel (!%p28_p1) target bundleno = 14 (0xe), region = 133 }
 0xced   : > { %s3227_s23 = smov %s3224_s15 }
 0xcee   :  { %1823 = vsyncpa [#allocation3], 1 }
 0xcef   :  { %1825 = vsyncpa [#allocation3 + $0x1], 1 }
 0xcf0   :  { %1826 = vsyncpa [#allocation6], 1 }
 0xcf1   :  { %1827 = vsyncpa [#allocation9], 1 }
 0xcf2   :  { %1828 = vsyncpa [#allocation12], 1 }
 0xcf3   :  { %1829 = vsyncpa [#allocation4], 1 }
 0xcf4   :  { %1831 = vsyncpa [#allocation4 + $0x1], 1 }

</bundles_post_ra>
